<compile_context>
chip_gen: v5e
topology: v5e:2x2
jax: 0.10.0
libtpu: 0.0.40
codegen_flags: <defaults>
</compile_context>

<pallas_src>
import math

import jax
import jax.numpy as jnp
from jax import lax
from jax.experimental import pallas as pl
from jax.experimental.pallas import tpu as pltpu

NUM_MAG_BINS = 5  # num_magnitude_bins default

# color op indices (order = dict order in the PyTorch module)
_IDENTITY, _BRIGHT, _CONTRAST, _SAT, _HUE, _GAMMA, _SHARP = range(7)


def _color_magnitude_table():
    return jnp.stack([
        jnp.zeros((NUM_MAG_BINS,), jnp.float32),        # Identity
        jnp.linspace(0.5, 2.0, NUM_MAG_BINS),           # Brightness
        jnp.linspace(0.5, 2.0, NUM_MAG_BINS),           # Contrast
        jnp.linspace(0.5, 2.0, NUM_MAG_BINS),           # Saturation
        jnp.linspace(-0.05, 0.05, NUM_MAG_BINS),        # Hue
        jnp.linspace(0.5, 2.0, NUM_MAG_BINS),           # Gamma
        jnp.linspace(0.5, 2.0, NUM_MAG_BINS),           # Sharpness
    ]).astype(jnp.float32)                              # (7, 5)


def _geometry_magnitude_table():
    shear_angle = math.degrees(0.3)
    return jnp.stack([
        jnp.zeros((NUM_MAG_BINS,), jnp.float32),                  # Identity
        jnp.linspace(-shear_angle, shear_angle, NUM_MAG_BINS),    # Shear
        jnp.linspace(-10.0, 10.0, NUM_MAG_BINS),                  # Translate
        jnp.linspace(-30.0, 30.0, NUM_MAG_BINS),                  # Rotate
    ]).astype(jnp.float32)                                        # (4, 5)


# --------------------------------------------------------------------------
# Fused kernel: value-producing Translate prologue + one pl.when-gated color
# op per image.  All per-image randomness arrives as (B,) SMEM scalars.
# --------------------------------------------------------------------------
def _make_kernel(H, W):
    inv_n = 1.0 / float(H * W)

    def kernel(cop_ref, sx_ref, sy_ref, mag_ref, img_ref, out_ref):
        b = pl.program_id(0)
        cop = cop_ref[b]          # color op index (0..6)
        sx = sx_ref[b]            # translate shift along x (lanes)
        sy = sy_ref[b]            # translate shift along y (sublanes)
        mag = mag_ref[b]          # color magnitude

        out_dtype = out_ref.dtype
        round_out = jnp.issubdtype(out_dtype, jnp.integer)

        def cast_out(v):
            if round_out:
                v = jnp.round(v)
            return v.astype(out_dtype)

        x = img_ref[...].astype(jnp.float32)   # (3, H, W), values in [0, 255]

        # -------- geometric prologue: Translate as a value (no scratch) -----
        # out[i, j] = in[i - sy, j - sx] with constant-0 fill.  forward()
        # guarantees sx and sy are mutually exclusive, so each branch builds a
        # single permutation matrix and three small matmuls on the idle MXU.
        def do_shift_x(img):
            ck = lax.broadcasted_iota(jnp.int32, (W, W), 0)    # src col
            cj = lax.broadcasted_iota(jnp.int32, (W, W), 1)    # out col
            perm = ((cj - sx) == ck).astype(jnp.float32)
            return jnp.stack([
                jnp.dot(img[c], perm, preferred_element_type=jnp.float32)
                for c in range(3)])

        def do_shift_y(img):
            ri = lax.broadcasted_iota(jnp.int32, (H, H), 0)    # out row
            rk = lax.broadcasted_iota(jnp.int32, (H, H), 1)    # src row
            perm = ((ri - sy) == rk).astype(jnp.float32)
            return jnp.stack([
                jnp.dot(perm, img[c], preferred_element_type=jnp.float32)
                for c in range(3)])

        t = lax.cond(
            sx != 0, do_shift_x,
            lambda img: lax.cond(sy != 0, do_shift_y, lambda a: a, img),
            x)

        def clip(v):
            return jnp.clip(v, 0.0, 255.0)

        def gray_of(img):                      # PIL "L" weights
            return 0.299 * img[0] + 0.587 * img[1] + 0.114 * img[2]

        # ---------------- color op: only the selected branch runs -----------
        @pl.when(cop == _IDENTITY)
        def _():
            out_ref[...] = cast_out(t)

        @pl.when(cop == _BRIGHT)
        def _():
            out_ref[...] = cast_out(clip(t * mag))

        @pl.when(cop == _CONTRAST)
        def _():
            # TODO(synk): PIL rounds the grayscale image to uint8 before the
            # mean; the float (torchvision-style) mean is used here.
            mean = jnp.sum(gray_of(t)) * inv_n
            out_ref[...] = cast_out(clip(mean * (1.0 - mag) + mag * t))

        @pl.when(cop == _SAT)
        def _():
            gray = gray_of(t)
            out_ref[...] = cast_out(clip(gray[None] * (1.0 - mag) + mag * t))

        @pl.when(cop == _HUE)
        def _():
            # HSV round-trip directly in the 0..255 domain (scale cancels in
            # h and s, and v carries the 0..255 range to the output).
            r, g, bl = t[0], t[1], t[2]
            maxc = jnp.maximum(jnp.maximum(r, g), bl)
            minc = jnp.minimum(jnp.minimum(r, g), bl)
            v = maxc
            delta = maxc - minc
            eps = 1e-5
            has_c = delta > eps
            inv_max = pl.reciprocal(jnp.maximum(maxc, eps), approx=True)
            s = jnp.where(maxc > eps, delta * inv_max, 0.0)
            inv_d = pl.reciprocal(jnp.where(has_c, delta, 1.0), approx=True)
            rc = (maxc - r) * inv_d
            gc = (maxc - g) * inv_d
            bc = (maxc - bl) * inv_d
            h = jnp.where(r == maxc, bc - gc,
                          jnp.where(g == maxc, 2.0 + rc - bc, 4.0 + gc - rc))
            h = jnp.where(has_c, (h * (1.0 / 6.0)) % 1.0, 0.0)
            h = (h + mag) % 1.0
            h6 = h * 6.0
            hi = jnp.floor(h6)
            f = h6 - hi
            pp = v * (1.0 - s)
            qq = v * (1.0 - s * f)
            tt = v * (1.0 - s * (1.0 - f))
            ii = hi.astype(jnp.int32) % 6
            m0, m1, m2 = ii == 0, ii == 1, ii == 2
            m3, m4 = ii == 3, ii == 4
            r2 = jnp.where(m0, v, jnp.where(m1, qq,
                 jnp.where(m2 | m3, pp, jnp.where(m4, tt, v))))
            g2 = jnp.where(m0, tt, jnp.where(m1 | m2, v,
                 jnp.where(m3, qq, pp)))
            b2 = jnp.where(m0 | m1, pp, jnp.where(m2, tt,
                 jnp.where(m3 | m4, v, qq)))
            # write channels directly (no stacked (3,H,W) temporary)
            out_ref[0] = cast_out(clip(r2))
            out_ref[1] = cast_out(clip(g2))
            out_ref[2] = cast_out(clip(b2))

        @pl.when(cop == _GAMMA)
        def _():
            xn = t * (1.0 / 255.0)
            out_ref[...] = cast_out(
                clip(255.0 * jnp.exp(mag * jnp.log(jnp.maximum(xn, 1e-8)))))

        @pl.when(cop == _SHARP)
        def _():
            # PIL SMOOTH 3x3 as a separable box blur + center correction
            # (4 full-image rolls instead of 8); border rows/cols keep the
            # original pixels, as PIL does.
            rowsum = t + jnp.roll(t, 1, axis=2) + jnp.roll(t, -1, axis=2)
            boxsum = (rowsum + jnp.roll(rowsum, 1, axis=1)
                      + jnp.roll(rowsum, -1, axis=1))
            sm = (boxsum + 4.0 * t) * (1.0 / 13.0)
            row = lax.broadcasted_iota(jnp.int32, (H, W), 0)
            col = lax.broadcasted_iota(jnp.int32, (H, W), 1)
            interior = (row > 0) & (row < H - 1) & (col > 0) & (col < W - 1)
            degenerate = jnp.where(interior[None], clip(sm), t)
            out_ref[...] = cast_out(clip(degenerate + mag * (t - degenerate)))

    return kernel


def _augment_pallas(imgs, c_idx, shift_x, shift_y, c_mag):
    """imgs: (B, 3, H, W), values in [0, 255], any float dtype (f32 / bf16)."""
    B, C, H, W = imgs.shape
    try:
        vmem_cap = int(pltpu.get_tpu_info().vmem_capacity_bytes)
    except Exception:                          # conservative fallback (v7x)
        vmem_cap = 64 * 1024 * 1024
    budget = (vmem_cap * 3) // 4               # leave headroom for temporaries
    working = 12 * C * H * W * 4               # ~2x in + 2x out + f32 branch temps
    vmem_limit = int(min(budget, max(32 * 1024 * 1024, working)))

    grid_spec = pltpu.PrefetchScalarGridSpec(
        num_scalar_prefetch=4,                 # c_idx, shift_x, shift_y, c_mag
        grid=(B,),
        in_specs=[pl.BlockSpec((None, C, H, W), lambda b, *_: (b, 0, 0, 0))],
        out_specs=pl.BlockSpec((None, C, H, W), lambda b, *_: (b, 0, 0, 0)),
    )
    return pl.pallas_call(
        _make_kernel(H, W),
        out_shape=jax.ShapeDtypeStruct((B, C, H, W), imgs.dtype),
        grid_spec=grid_spec,
        compiler_params=pltpu.CompilerParams(
            dimension_semantics=("parallel",),     # both TCs on v7x
            vmem_limit_bytes=vmem_limit,
        ),
    )(c_idx, shift_x, shift_y, c_mag, imgs)


# --------------------------------------------------------------------------
# Forward: mirrors Augment_T3PO_Color.forward (train path, 'return_all'),
# batched over images, randomness fully on device.
# --------------------------------------------------------------------------
@jax.jit
def t3po_color_forward(imgs, key):
    """imgs: (B, 3, H, W), values in [0, 255] (f32 or bf16).  Returns
    (aug_imgs, op_index, op_magnitude_index, op_sign); the scalar outputs are
    per-image (B,) device arrays (no host<->device sync per image)."""
    B = imgs.shape[0]
    kg, kgm, kdir, kc, kcm = jax.random.split(key, 5)

    # ---- random geometric op (torch.randint equivalents, on device) ----
    g_idx = jax.random.randint(kg, (B,), 0, 4)      # Identity/Shear/Translate/Rotate
    g_mag_idx = jax.random.randint(kgm, (B,), 0, NUM_MAG_BINS)
    g_mag = _geometry_magnitude_table()[g_idx, g_mag_idx]
    along_x = jax.random.uniform(kdir, (B,)) > 0.5  # random.random() > 0.5 -> X
    is_translate = g_idx == 2
    # TODO(synk): Shear / Rotate need an arbitrary-angle nearest-neighbour
    # affine resample (per-pixel gather); they are applied as Identity here.
    shift = jnp.round(g_mag).astype(jnp.int32)
    shift_x = jnp.where(is_translate & along_x, shift, 0).astype(jnp.int32)     # translate_x_impl
    shift_y = jnp.where(is_translate & (~along_x), -shift, 0).astype(jnp.int32) # translate_y_impl

    # ---- random color op ----
    c_idx = jax.random.randint(kc, (B,), 0, 7)
    c_mag_idx = jax.random.randint(kcm, (B,), 0, NUM_MAG_BINS)
    c_mag = _color_magnitude_table()[c_idx, c_mag_idx].astype(jnp.float32)
    op_sign = (c_idx != 0).astype(jnp.int32)

    out = _augment_pallas(imgs, c_idx.astype(jnp.int32), shift_x, shift_y, c_mag)
    return out, c_idx, c_mag_idx, op_sign


if __name__ == "__main__":
    key = jax.random.PRNGKey(0)
    k_img, k_aug = jax.random.split(key)
    # small batch of RGB images, CHW, integer-valued [0, 255] (uint8-like)
    imgs = jnp.floor(jax.random.uniform(k_img, (2, 3, 16, 16), jnp.float32) * 255.0)

    out, op_index, op_mag_index, op_sign = t3po_color_forward(imgs, k_aug)
    jax.block_until_ready(out)
    assert out.shape == imgs.shape and out.dtype == imgs.dtype
    assert bool(jnp.all(jnp.isfinite(out)))

    B, C, H, W = imgs.shape
    zeros_i = jnp.zeros((B,), jnp.int32)
    zeros_f = jnp.zeros((B,), jnp.float32)

    # Translate-only (Identity color op): verify direction + zero fill against
    # a pure-JAX reference.
    tx = _augment_pallas(imgs, zeros_i, jnp.full((B,), 5, jnp.int32), zeros_i, zeros_f)
    ref_tx = jnp.pad(imgs[..., : W - 5], ((0, 0), (0, 0), (0, 0), (5, 0)))
    assert bool(jnp.allclose(tx, ref_tx, atol=1e-3))
    ty = _augment_pallas(imgs, zeros_i, zeros_i, jnp.full((B,), -5, jnp.int32), zeros_f)
    ref_ty = jnp.pad(imgs[:, :, 5:, :], ((0, 0), (0, 0), (0, 5), (0, 0)))
    assert bool(jnp.allclose(ty, ref_ty, atol=1e-3))

    # Exercise the heavier gated branches (same compiled kernel, forced params).
    out2 = _augment_pallas(imgs,
                           jnp.array([4, 6], jnp.int32),         # Hue, Sharpness
                           jnp.array([5, 0], jnp.int32),
                           jnp.array([0, -5], jnp.int32),
                           jnp.array([0.05, 2.0], jnp.float32))
    out3 = _augment_pallas(imgs,
                           jnp.array([2, 5], jnp.int32),         # Contrast, Gamma
                           zeros_i, zeros_i,
                           jnp.array([0.5, 2.0], jnp.float32))
    # bf16 I/O path: exact for 0..255-valued data, halves HBM traffic.
    out4 = _augment_pallas(imgs.astype(jnp.bfloat16),
                           jnp.array([1, 3], jnp.int32),         # Brightness, Saturation
                           zeros_i, zeros_i,
                           jnp.array([1.5, 0.7], jnp.float32))
    jax.block_until_ready((out2, out3, out4))
    assert bool(jnp.all(jnp.isfinite(out2))) and bool(jnp.all(jnp.isfinite(out3)))
    assert out4.dtype == jnp.bfloat16 and out4.shape == imgs.shape

    print("KERNEL_OK")
</pallas_src>

<mosaic_0001>
module attributes {stable_mosaic.version = 11 : i64} {
  func.func @kernel(%arg0: i32, %arg1: memref<2xi32, #tpu.memory_space<smem>>, %arg2: memref<2xi32, #tpu.memory_space<smem>>, %arg3: memref<2xi32, #tpu.memory_space<smem>>, %arg4: memref<2xf32, #tpu.memory_space<smem>>, %arg5: memref<1x3x16x16xf32, #tpu.memory_space<vmem>>, %arg6: memref<1x3x16x16xf32, #tpu.memory_space<vmem>>) attributes {dimension_semantics = [#tpu.dimension_semantics<parallel>], iteration_bounds = array<i64: 2>, scalar_prefetch = 4 : i64, scratch_operands = 0 : i64, tpu.core_type = #tpu.core_type<tc>, window_params = [{transform_indices = @transform_0, window_bounds = array<i64: 1, 3, 16, 16>}, {transform_indices = @transform_1, window_bounds = array<i64: 1, 3, 16, 16>}]} {
    %0 = arith.index_cast %arg0 : i32 to index
    %1 = memref.load %arg1[%0] : memref<2xi32, #tpu.memory_space<smem>>
    %2 = arith.index_cast %arg0 : i32 to index
    %3 = memref.load %arg2[%2] : memref<2xi32, #tpu.memory_space<smem>>
    %4 = arith.index_cast %arg0 : i32 to index
    %5 = memref.load %arg3[%4] : memref<2xi32, #tpu.memory_space<smem>>
    %6 = arith.index_cast %arg0 : i32 to index
    %7 = memref.load %arg4[%6] : memref<2xf32, #tpu.memory_space<smem>>
    %c0 = arith.constant 0 : index
    %c0_0 = arith.constant 0 : index
    %c0_1 = arith.constant 0 : index
    %c0_2 = arith.constant 0 : index
    %8 = vector.load %arg5[%c0, %c0_0, %c0_1, %c0_2] : memref<1x3x16x16xf32, #tpu.memory_space<vmem>>, vector<1x3x16x16xf32>
    %9 = vector.shape_cast %8 : vector<1x3x16x16xf32> to vector<3x16x16xf32>
    %c0_i32 = arith.constant 0 : i32
    %10 = arith.cmpi ne, %3, %c0_i32 : i32
    %11 = arith.extui %10 : i1 to i32
    %c0_i32_3 = arith.constant 0 : i32
    %12 = arith.cmpi ne, %11, %c0_i32_3 : i32
    %13 = scf.if %12 -> (vector<3x16x16xf32>) {
      %35 = tpu.iota {dimensions = array<i32: 0>} : vector<16x16xi32>
      %36 = tpu.iota {dimensions = array<i32: 1>} : vector<16x16xi32>
      %37 = vector.broadcast %3 : i32 to vector<16x16xi32>
      %38 = arith.subi %36, %37 : vector<16x16xi32>
      %39 = arith.cmpi eq, %38, %35 : vector<16x16xi32>
      %40 = arith.extui %39 : vector<16x16xi1> to vector<16x16xi32>
      %41 = arith.sitofp %40 : vector<16x16xi32> to vector<16x16xf32>
      %42 = vector.extract_strided_slice %9 {offsets = [0, 0, 0], sizes = [1, 16, 16], strides = [1, 1, 1]} : vector<3x16x16xf32> to vector<1x16x16xf32>
      %43 = vector.shape_cast %42 : vector<1x16x16xf32> to vector<16x16xf32>
      %cst = arith.constant dense<0.000000e+00> : vector<16x16xf32>
      %44 = tpu.matmul %43, %41, %cst {dimension_numbers = #tpu.dot_dimension_numbers<[1], [0], [0], [1], [0, 0, 1, 1], [], []>} : vector<16x16xf32>, vector<16x16xf32>, vector<16x16xf32> -> vector<16x16xf32>
      %45 = vector.extract_strided_slice %9 {offsets = [1, 0, 0], sizes = [1, 16, 16], strides = [1, 1, 1]} : vector<3x16x16xf32> to vector<1x16x16xf32>
      %46 = vector.shape_cast %45 : vector<1x16x16xf32> to vector<16x16xf32>
      %cst_12 = arith.constant dense<0.000000e+00> : vector<16x16xf32>
      %47 = tpu.matmul %46, %41, %cst_12 {dimension_numbers = #tpu.dot_dimension_numbers<[1], [0], [0], [1], [0, 0, 1, 1], [], []>} : vector<16x16xf32>, vector<16x16xf32>, vector<16x16xf32> -> vector<16x16xf32>
      %48 = vector.extract_strided_slice %9 {offsets = [2, 0, 0], sizes = [1, 16, 16], strides = [1, 1, 1]} : vector<3x16x16xf32> to vector<1x16x16xf32>
      %49 = vector.shape_cast %48 : vector<1x16x16xf32> to vector<16x16xf32>
      %cst_13 = arith.constant dense<0.000000e+00> : vector<16x16xf32>
      %50 = tpu.matmul %49, %41, %cst_13 {dimension_numbers = #tpu.dot_dimension_numbers<[1], [0], [0], [1], [0, 0, 1, 1], [], []>} : vector<16x16xf32>, vector<16x16xf32>, vector<16x16xf32> -> vector<16x16xf32>
      %51 = vector.shape_cast %44 : vector<16x16xf32> to vector<1x16x16xf32>
      %52 = vector.shape_cast %47 : vector<16x16xf32> to vector<1x16x16xf32>
      %53 = vector.shape_cast %50 : vector<16x16xf32> to vector<1x16x16xf32>
      %54 = tpu.concatenate %51, %52, %53 in 0 : vector<1x16x16xf32>, vector<1x16x16xf32>, vector<1x16x16xf32> -> vector<3x16x16xf32>
      scf.yield %54 : vector<3x16x16xf32>
    } else {
      %c0_i32_12 = arith.constant 0 : i32
      %35 = arith.cmpi ne, %5, %c0_i32_12 : i32
      %36 = arith.extui %35 : i1 to i32
      %c0_i32_13 = arith.constant 0 : i32
      %37 = arith.cmpi ne, %36, %c0_i32_13 : i32
      %38 = scf.if %37 -> (vector<3x16x16xf32>) {
        %39 = tpu.iota {dimensions = array<i32: 0>} : vector<16x16xi32>
        %40 = tpu.iota {dimensions = array<i32: 1>} : vector<16x16xi32>
        %41 = vector.broadcast %5 : i32 to vector<16x16xi32>
        %42 = arith.subi %39, %41 : vector<16x16xi32>
        %43 = arith.cmpi eq, %42, %40 : vector<16x16xi32>
        %44 = arith.extui %43 : vector<16x16xi1> to vector<16x16xi32>
        %45 = arith.sitofp %44 : vector<16x16xi32> to vector<16x16xf32>
        %46 = vector.extract_strided_slice %9 {offsets = [0, 0, 0], sizes = [1, 16, 16], strides = [1, 1, 1]} : vector<3x16x16xf32> to vector<1x16x16xf32>
        %47 = vector.shape_cast %46 : vector<1x16x16xf32> to vector<16x16xf32>
        %cst = arith.constant dense<0.000000e+00> : vector<16x16xf32>
        %48 = tpu.matmul %45, %47, %cst {dimension_numbers = #tpu.dot_dimension_numbers<[1], [0], [0], [1], [0, 0, 1, 1], [], []>} : vector<16x16xf32>, vector<16x16xf32>, vector<16x16xf32> -> vector<16x16xf32>
        %49 = vector.extract_strided_slice %9 {offsets = [1, 0, 0], sizes = [1, 16, 16], strides = [1, 1, 1]} : vector<3x16x16xf32> to vector<1x16x16xf32>
        %50 = vector.shape_cast %49 : vector<1x16x16xf32> to vector<16x16xf32>
        %cst_14 = arith.constant dense<0.000000e+00> : vector<16x16xf32>
        %51 = tpu.matmul %45, %50, %cst_14 {dimension_numbers = #tpu.dot_dimension_numbers<[1], [0], [0], [1], [0, 0, 1, 1], [], []>} : vector<16x16xf32>, vector<16x16xf32>, vector<16x16xf32> -> vector<16x16xf32>
        %52 = vector.extract_strided_slice %9 {offsets = [2, 0, 0], sizes = [1, 16, 16], strides = [1, 1, 1]} : vector<3x16x16xf32> to vector<1x16x16xf32>
        %53 = vector.shape_cast %52 : vector<1x16x16xf32> to vector<16x16xf32>
        %cst_15 = arith.constant dense<0.000000e+00> : vector<16x16xf32>
        %54 = tpu.matmul %45, %53, %cst_15 {dimension_numbers = #tpu.dot_dimension_numbers<[1], [0], [0], [1], [0, 0, 1, 1], [], []>} : vector<16x16xf32>, vector<16x16xf32>, vector<16x16xf32> -> vector<16x16xf32>
        %55 = vector.shape_cast %48 : vector<16x16xf32> to vector<1x16x16xf32>
        %56 = vector.shape_cast %51 : vector<16x16xf32> to vector<1x16x16xf32>
        %57 = vector.shape_cast %54 : vector<16x16xf32> to vector<1x16x16xf32>
        %58 = tpu.concatenate %55, %56, %57 in 0 : vector<1x16x16xf32>, vector<1x16x16xf32>, vector<1x16x16xf32> -> vector<3x16x16xf32>
        scf.yield %58 : vector<3x16x16xf32>
      } else {
        scf.yield %9 : vector<3x16x16xf32>
      }
      scf.yield %38 : vector<3x16x16xf32>
    }
    %c0_i32_4 = arith.constant 0 : i32
    %14 = arith.cmpi eq, %1, %c0_i32_4 : i32
    %15 = arith.extui %14 : i1 to i32
    %c0_i32_5 = arith.constant 0 : i32
    %16 = arith.cmpi ne, %15, %c0_i32_5 : i32
    scf.if %16 {
      %c0_12 = arith.constant 0 : index
      %c0_13 = arith.constant 0 : index
      %c0_14 = arith.constant 0 : index
      %c0_15 = arith.constant 0 : index
      %35 = vector.load %arg6[%c0_12, %c0_13, %c0_14, %c0_15] : memref<1x3x16x16xf32, #tpu.memory_space<vmem>>, vector<1x3x16x16xf32>
      %36 = vector.shape_cast %35 : vector<1x3x16x16xf32> to vector<3x16x16xf32>
      %37 = vector.shape_cast %13 : vector<3x16x16xf32> to vector<1x3x16x16xf32>
      tpu.vector_store %arg6[%c0_12, %c0_13, %c0_14, %c0_15], %37 {strides = array<i32>} : memref<1x3x16x16xf32, #tpu.memory_space<vmem>>, vector<1x3x16x16xf32>,
    } else {
    }
    %c1_i32 = arith.constant 1 : i32
    %17 = arith.cmpi eq, %1, %c1_i32 : i32
    %18 = arith.extui %17 : i1 to i32
    %c0_i32_6 = arith.constant 0 : i32
    %19 = arith.cmpi ne, %18, %c0_i32_6 : i32
    scf.if %19 {
      %35 = vector.broadcast %7 : f32 to vector<3x16x16xf32>
      %36 = arith.mulf %13, %35 : vector<3x16x16xf32>
      %cst = arith.constant 0.000000e+00 : f32
      %cst_12 = arith.constant 2.550000e+02 : f32
      %37 = vector.broadcast %cst : f32 to vector<3x16x16xf32>
      %38 = arith.maximumf %37, %36 : vector<3x16x16xf32>
      %39 = vector.broadcast %cst_12 : f32 to vector<3x16x16xf32>
      %40 = arith.minimumf %39, %38 : vector<3x16x16xf32>
      %c0_13 = arith.constant 0 : index
      %c0_14 = arith.constant 0 : index
      %c0_15 = arith.constant 0 : index
      %c0_16 = arith.constant 0 : index
      %41 = vector.load %arg6[%c0_13, %c0_14, %c0_15, %c0_16] : memref<1x3x16x16xf32, #tpu.memory_space<vmem>>, vector<1x3x16x16xf32>
      %42 = vector.shape_cast %41 : vector<1x3x16x16xf32> to vector<3x16x16xf32>
      %43 = vector.shape_cast %40 : vector<3x16x16xf32> to vector<1x3x16x16xf32>
      tpu.vector_store %arg6[%c0_13, %c0_14, %c0_15, %c0_16], %43 {strides = array<i32>} : memref<1x3x16x16xf32, #tpu.memory_space<vmem>>, vector<1x3x16x16xf32>,
    } else {
    }
    %c2_i32 = arith.constant 2 : i32
    %20 = arith.cmpi eq, %1, %c2_i32 : i32
    %21 = arith.extui %20 : i1 to i32
    %c0_i32_7 = arith.constant 0 : i32
    %22 = arith.cmpi ne, %21, %c0_i32_7 : i32
    scf.if %22 {
      %35 = vector.extract_strided_slice %13 {offsets = [0, 0, 0], sizes = [1, 16, 16], strides = [1, 1, 1]} : vector<3x16x16xf32> to vector<1x16x16xf32>
      %36 = vector.shape_cast %35 : vector<1x16x16xf32> to vector<16x16xf32>
      %cst = arith.constant 2.990000e-01 : f32
      %37 = vector.broadcast %cst : f32 to vector<16x16xf32>
      %38 = arith.mulf %37, %36 : vector<16x16xf32>
      %39 = vector.extract_strided_slice %13 {offsets = [1, 0, 0], sizes = [1, 16, 16], strides = [1, 1, 1]} : vector<3x16x16xf32> to vector<1x16x16xf32>
      %40 = vector.shape_cast %39 : vector<1x16x16xf32> to vector<16x16xf32>
      %cst_12 = arith.constant 5.870000e-01 : f32
      %41 = vector.broadcast %cst_12 : f32 to vector<16x16xf32>
      %42 = arith.mulf %41, %40 : vector<16x16xf32>
      %43 = arith.addf %38, %42 : vector<16x16xf32>
      %44 = vector.extract_strided_slice %13 {offsets = [2, 0, 0], sizes = [1, 16, 16], strides = [1, 1, 1]} : vector<3x16x16xf32> to vector<1x16x16xf32>
      %45 = vector.shape_cast %44 : vector<1x16x16xf32> to vector<16x16xf32>
      %cst_13 = arith.constant 1.140000e-01 : f32
      %46 = vector.broadcast %cst_13 : f32 to vector<16x16xf32>
      %47 = arith.mulf %46, %45 : vector<16x16xf32>
      %48 = arith.addf %43, %47 : vector<16x16xf32>
      %49 = vector.shape_cast %48 : vector<16x16xf32> to vector<1x16x16xf32>
      %cst_14 = arith.constant dense<0.000000e+00> : vector<1xf32>
      %50 = vector.multi_reduction <add>, %49, %cst_14 [1, 2] : vector<1x16x16xf32> to vector<1xf32>
      %51 = vector.shape_cast %50 : vector<1xf32> to vector<1x1x1xf32>
      %52 = vector.extract %51[0, 0, 0] : f32 from vector<1x1x1xf32>
      %cst_15 = arith.constant 3.906250e-03 : f32
      %53 = arith.mulf %52, %cst_15 : f32
      %cst_16 = arith.constant 1.000000e+00 : f32
      %54 = arith.subf %cst_16, %7 : f32
      %55 = arith.mulf %53, %54 : f32
      %56 = vector.broadcast %7 : f32 to vector<3x16x16xf32>
      %57 = arith.mulf %56, %13 : vector<3x16x16xf32>
      %58 = vector.broadcast %55 : f32 to vector<3x16x16xf32>
      %59 = arith.addf %58, %57 : vector<3x16x16xf32>
      %cst_17 = arith.constant 0.000000e+00 : f32
      %cst_18 = arith.constant 2.550000e+02 : f32
      %60 = vector.broadcast %cst_17 : f32 to vector<3x16x16xf32>
      %61 = arith.maximumf %60, %59 : vector<3x16x16xf32>
      %62 = vector.broadcast %cst_18 : f32 to vector<3x16x16xf32>
      %63 = arith.minimumf %62, %61 : vector<3x16x16xf32>
      %c0_19 = arith.constant 0 : index
      %c0_20 = arith.constant 0 : index
      %c0_21 = arith.constant 0 : index
      %c0_22 = arith.constant 0 : index
      %64 = vector.load %arg6[%c0_19, %c0_20, %c0_21, %c0_22] : memref<1x3x16x16xf32, #tpu.memory_space<vmem>>, vector<1x3x16x16xf32>
      %65 = vector.shape_cast %64 : vector<1x3x16x16xf32> to vector<3x16x16xf32>
      %66 = vector.shape_cast %63 : vector<3x16x16xf32> to vector<1x3x16x16xf32>
      tpu.vector_store %arg6[%c0_19, %c0_20, %c0_21, %c0_22], %66 {strides = array<i32>} : memref<1x3x16x16xf32, #tpu.memory_space<vmem>>, vector<1x3x16x16xf32>,
    } else {
    }
    %c3_i32 = arith.constant 3 : i32
    %23 = arith.cmpi eq, %1, %c3_i32 : i32
    %24 = arith.extui %23 : i1 to i32
    %c0_i32_8 = arith.constant 0 : i32
    %25 = arith.cmpi ne, %24, %c0_i32_8 : i32
    scf.if %25 {
      %35 = vector.extract_strided_slice %13 {offsets = [0, 0, 0], sizes = [1, 16, 16], strides = [1, 1, 1]} : vector<3x16x16xf32> to vector<1x16x16xf32>
      %36 = vector.shape_cast %35 : vector<1x16x16xf32> to vector<16x16xf32>
      %cst = arith.constant 2.990000e-01 : f32
      %37 = vector.broadcast %cst : f32 to vector<16x16xf32>
      %38 = arith.mulf %37, %36 : vector<16x16xf32>
      %39 = vector.extract_strided_slice %13 {offsets = [1, 0, 0], sizes = [1, 16, 16], strides = [1, 1, 1]} : vector<3x16x16xf32> to vector<1x16x16xf32>
      %40 = vector.shape_cast %39 : vector<1x16x16xf32> to vector<16x16xf32>
      %cst_12 = arith.constant 5.870000e-01 : f32
      %41 = vector.broadcast %cst_12 : f32 to vector<16x16xf32>
      %42 = arith.mulf %41, %40 : vector<16x16xf32>
      %43 = arith.addf %38, %42 : vector<16x16xf32>
      %44 = vector.extract_strided_slice %13 {offsets = [2, 0, 0], sizes = [1, 16, 16], strides = [1, 1, 1]} : vector<3x16x16xf32> to vector<1x16x16xf32>
      %45 = vector.shape_cast %44 : vector<1x16x16xf32> to vector<16x16xf32>
      %cst_13 = arith.constant 1.140000e-01 : f32
      %46 = vector.broadcast %cst_13 : f32 to vector<16x16xf32>
      %47 = arith.mulf %46, %45 : vector<16x16xf32>
      %48 = arith.addf %43, %47 : vector<16x16xf32>
      %49 = vector.shape_cast %48 : vector<16x16xf32> to vector<1x16x16xf32>
      %cst_14 = arith.constant 1.000000e+00 : f32
      %50 = arith.subf %cst_14, %7 : f32
      %51 = vector.broadcast %50 : f32 to vector<1x16x16xf32>
      %52 = arith.mulf %49, %51 : vector<1x16x16xf32>
      %53 = vector.broadcast %7 : f32 to vector<3x16x16xf32>
      %54 = arith.mulf %53, %13 : vector<3x16x16xf32>
      %55 = vector.broadcast %52 : vector<1x16x16xf32> to vector<3x16x16xf32>
      %56 = arith.addf %55, %54 : vector<3x16x16xf32>
      %cst_15 = arith.constant 0.000000e+00 : f32
      %cst_16 = arith.constant 2.550000e+02 : f32
      %57 = vector.broadcast %cst_15 : f32 to vector<3x16x16xf32>
      %58 = arith.maximumf %57, %56 : vector<3x16x16xf32>
      %59 = vector.broadcast %cst_16 : f32 to vector<3x16x16xf32>
      %60 = arith.minimumf %59, %58 : vector<3x16x16xf32>
      %c0_17 = arith.constant 0 : index
      %c0_18 = arith.constant 0 : index
      %c0_19 = arith.constant 0 : index
      %c0_20 = arith.constant 0 : index
      %61 = vector.load %arg6[%c0_17, %c0_18, %c0_19, %c0_20] : memref<1x3x16x16xf32, #tpu.memory_space<vmem>>, vector<1x3x16x16xf32>
      %62 = vector.shape_cast %61 : vector<1x3x16x16xf32> to vector<3x16x16xf32>
      %63 = vector.shape_cast %60 : vector<3x16x16xf32> to vector<1x3x16x16xf32>
      tpu.vector_store %arg6[%c0_17, %c0_18, %c0_19, %c0_20], %63 {strides = array<i32>} : memref<1x3x16x16xf32, #tpu.memory_space<vmem>>, vector<1x3x16x16xf32>,
    } else {
    }
    %c4_i32 = arith.constant 4 : i32
    %26 = arith.cmpi eq, %1, %c4_i32 : i32
    %27 = arith.extui %26 : i1 to i32
    %c0_i32_9 = arith.constant 0 : i32
    %28 = arith.cmpi ne, %27, %c0_i32_9 : i32
    scf.if %28 {
      %35 = vector.extract_strided_slice %13 {offsets = [0, 0, 0], sizes = [1, 16, 16], strides = [1, 1, 1]} : vector<3x16x16xf32> to vector<1x16x16xf32>
      %36 = vector.shape_cast %35 : vector<1x16x16xf32> to vector<16x16xf32>
      %37 = vector.extract_strided_slice %13 {offsets = [1, 0, 0], sizes = [1, 16, 16], strides = [1, 1, 1]} : vector<3x16x16xf32> to vector<1x16x16xf32>
      %38 = vector.shape_cast %37 : vector<1x16x16xf32> to vector<16x16xf32>
      %39 = vector.extract_strided_slice %13 {offsets = [2, 0, 0], sizes = [1, 16, 16], strides = [1, 1, 1]} : vector<3x16x16xf32> to vector<1x16x16xf32>
      %40 = vector.shape_cast %39 : vector<1x16x16xf32> to vector<16x16xf32>
      %41 = arith.maximumf %36, %38 : vector<16x16xf32>
      %42 = arith.maximumf %41, %40 : vector<16x16xf32>
      %43 = arith.minimumf %36, %38 : vector<16x16xf32>
      %44 = arith.minimumf %43, %40 : vector<16x16xf32>
      %45 = arith.subf %42, %44 : vector<16x16xf32>
      %cst = arith.constant 9.99999974E-6 : f32
      %46 = vector.broadcast %cst : f32 to vector<16x16xf32>
      %47 = arith.cmpf ogt, %45, %46 : vector<16x16xf32>
      %cst_12 = arith.constant 9.99999974E-6 : f32
      %48 = vector.broadcast %cst_12 : f32 to vector<16x16xf32>
      %49 = arith.maximumf %42, %48 : vector<16x16xf32>
      %50 = tpu.reciprocal %49 {approx = true} : vector<16x16xf32> -> vector<16x16xf32>
      %cst_13 = arith.constant 9.99999974E-6 : f32
      %51 = vector.broadcast %cst_13 : f32 to vector<16x16xf32>
      %52 = arith.cmpf ogt, %42, %51 : vector<16x16xf32>
      %53 = arith.mulf %45, %50 : vector<16x16xf32>
      %cst_14 = arith.constant 0.000000e+00 : f32
      %54 = vector.broadcast %cst_14 : f32 to vector<16x16xf32>
      %55 = arith.select %52, %53, %54 : vector<16x16xi1>, vector<16x16xf32>
      %cst_15 = arith.constant 1.000000e+00 : f32
      %56 = vector.broadcast %cst_15 : f32 to vector<16x16xf32>
      %57 = arith.select %47, %45, %56 : vector<16x16xi1>, vector<16x16xf32>
      %58 = tpu.reciprocal %57 {approx = true} : vector<16x16xf32> -> vector<16x16xf32>
      %59 = arith.subf %42, %36 : vector<16x16xf32>
      %60 = arith.mulf %59, %58 : vector<16x16xf32>
      %61 = arith.subf %42, %38 : vector<16x16xf32>
      %62 = arith.mulf %61, %58 : vector<16x16xf32>
      %63 = arith.subf %42, %40 : vector<16x16xf32>
      %64 = arith.mulf %63, %58 : vector<16x16xf32>
      %65 = arith.cmpf oeq, %36, %42 : vector<16x16xf32>
      %66 = arith.subf %64, %62 : vector<16x16xf32>
      %67 = arith.cmpf oeq, %38, %42 : vector<16x16xf32>
      %cst_16 = arith.constant 2.000000e+00 : f32
      %68 = vector.broadcast %cst_16 : f32 to vector<16x16xf32>
      %69 = arith.addf %68, %60 : vector<16x16xf32>
      %70 = arith.subf %69, %64 : vector<16x16xf32>
      %cst_17 = arith.constant 4.000000e+00 : f32
      %71 = vector.broadcast %cst_17 : f32 to vector<16x16xf32>
      %72 = arith.addf %71, %62 : vector<16x16xf32>
      %73 = arith.subf %72, %60 : vector<16x16xf32>
      %74 = arith.select %67, %70, %73 : vector<16x16xi1>, vector<16x16xf32>
      %75 = arith.select %65, %66, %74 : vector<16x16xi1>, vector<16x16xf32>
      %cst_18 = arith.constant 0.166666672 : f32
      %76 = vector.broadcast %cst_18 : f32 to vector<16x16xf32>
      %77 = arith.mulf %75, %76 : vector<16x16xf32>
      %cst_19 = arith.constant 1.000000e+00 : f32
      %78 = vector.broadcast %cst_19 : f32 to vector<16x16xf32>
      %79 = arith.remf %77, %78 : vector<16x16xf32>
      %cst_20 = arith.constant 0.000000e+00 : f32
      %80 = vector.broadcast %cst_20 : f32 to vector<16x16xf32>
      %81 = arith.cmpf one, %79, %80 : vector<16x16xf32>
      %cst_21 = arith.constant 0.000000e+00 : f32
      %82 = vector.broadcast %cst_21 : f32 to vector<16x16xf32>
      %83 = arith.cmpf olt, %79, %82 : vector<16x16xf32>
      %cst_22 = arith.constant 0.000000e+00 : f32
      %84 = arith.cmpf olt, %cst_19, %cst_22 : f32
      %85 = vector.broadcast %84 : i1 to vector<16x16xi1>
      %86 = vector.broadcast %85 : vector<16x16xi1> to vector<16x16xi1>
      %87 = arith.xori %83, %86 : vector<16x16xi1>
      %88 = arith.andi %87, %81 : vector<16x16xi1>
      %89 = vector.broadcast %cst_19 : f32 to vector<16x16xf32>
      %90 = arith.addf %79, %89 : vector<16x16xf32>
      %91 = arith.select %88, %90, %79 : vector<16x16xi1>, vector<16x16xf32>
      %cst_23 = arith.constant 0.000000e+00 : f32
      %92 = vector.broadcast %cst_23 : f32 to vector<16x16xf32>
      %93 = arith.select %47, %91, %92 : vector<16x16xi1>, vector<16x16xf32>
      %94 = vector.broadcast %7 : f32 to vector<16x16xf32>
      %95 = arith.addf %93, %94 : vector<16x16xf32>
      %cst_24 = arith.constant 1.000000e+00 : f32
      %96 = vector.broadcast %cst_24 : f32 to vector<16x16xf32>
      %97 = arith.remf %95, %96 : vector<16x16xf32>
      %cst_25 = arith.constant 0.000000e+00 : f32
      %98 = vector.broadcast %cst_25 : f32 to vector<16x16xf32>
      %99 = arith.cmpf one, %97, %98 : vector<16x16xf32>
      %cst_26 = arith.constant 0.000000e+00 : f32
      %100 = vector.broadcast %cst_26 : f32 to vector<16x16xf32>
      %101 = arith.cmpf olt, %97, %100 : vector<16x16xf32>
      %cst_27 = arith.constant 0.000000e+00 : f32
      %102 = arith.cmpf olt, %cst_24, %cst_27 : f32
      %103 = vector.broadcast %102 : i1 to vector<16x16xi1>
      %104 = vector.broadcast %103 : vector<16x16xi1> to vector<16x16xi1>
      %105 = arith.xori %101, %104 : vector<16x16xi1>
      %106 = arith.andi %105, %99 : vector<16x16xi1>
      %107 = vector.broadcast %cst_24 : f32 to vector<16x16xf32>
      %108 = arith.addf %97, %107 : vector<16x16xf32>
      %109 = arith.select %106, %108, %97 : vector<16x16xi1>, vector<16x16xf32>
      %cst_28 = arith.constant 6.000000e+00 : f32
      %110 = vector.broadcast %cst_28 : f32 to vector<16x16xf32>
      %111 = arith.mulf %109, %110 : vector<16x16xf32>
      %112 = math.floor %111 : vector<16x16xf32>
      %113 = arith.subf %111, %112 : vector<16x16xf32>
      %cst_29 = arith.constant 1.000000e+00 : f32
      %114 = vector.broadcast %cst_29 : f32 to vector<16x16xf32>
      %115 = arith.subf %114, %55 : vector<16x16xf32>
      %116 = arith.mulf %42, %115 : vector<16x16xf32>
      %117 = arith.mulf %55, %113 : vector<16x16xf32>
      %cst_30 = arith.constant 1.000000e+00 : f32
      %118 = vector.broadcast %cst_30 : f32 to vector<16x16xf32>
      %119 = arith.subf %118, %117 : vector<16x16xf32>
      %120 = arith.mulf %42, %119 : vector<16x16xf32>
      %cst_31 = arith.constant 1.000000e+00 : f32
      %121 = vector.broadcast %cst_31 : f32 to vector<16x16xf32>
      %122 = arith.subf %121, %113 : vector<16x16xf32>
      %123 = arith.mulf %55, %122 : vector<16x16xf32>
      %cst_32 = arith.constant 1.000000e+00 : f32
      %124 = vector.broadcast %cst_32 : f32 to vector<16x16xf32>
      %125 = arith.subf %124, %123 : vector<16x16xf32>
      %126 = arith.mulf %42, %125 : vector<16x16xf32>
      %127 = arith.fptosi %112 : vector<16x16xf32> to vector<16x16xi32>
      %c6_i32_33 = arith.constant 6 : i32
      %c0_i32_34 = arith.constant 0 : i32
      %128 = arith.cmpi eq, %c6_i32_33, %c0_i32_34 : i32
      %c1_i32_35 = arith.constant 1 : i32
      %129 = arith.select %128, %c1_i32_35, %c6_i32_33 : i32
      %130 = vector.broadcast %129 : i32 to vector<16x16xi32>
      %131 = arith.remsi %127, %130 : vector<16x16xi32>
      %c0_i32_36 = arith.constant 0 : i32
      %132 = vector.broadcast %c0_i32_36 : i32 to vector<16x16xi32>
      %133 = arith.cmpi ne, %131, %132 : vector<16x16xi32>
      %c0_i32_37 = arith.constant 0 : i32
      %134 = vector.broadcast %c0_i32_37 : i32 to vector<16x16xi32>
      %135 = arith.cmpi slt, %131, %134 : vector<16x16xi32>
      %c0_i32_38 = arith.constant 0 : i32
      %136 = arith.cmpi slt, %129, %c0_i32_38 : i32
      %137 = vector.broadcast %136 : i1 to vector<16x16xi1>
      %138 = vector.broadcast %137 : vector<16x16xi1> to vector<16x16xi1>
      %139 = arith.xori %135, %138 : vector<16x16xi1>
      %140 = arith.andi %139, %133 : vector<16x16xi1>
      %141 = vector.broadcast %129 : i32 to vector<16x16xi32>
      %142 = arith.addi %131, %141 : vector<16x16xi32>
      %143 = arith.select %140, %142, %131 : vector<16x16xi1>, vector<16x16xi32>
      %c0_i32_39 = arith.constant 0 : i32
      %144 = vector.broadcast %c0_i32_39 : i32 to vector<16x16xi32>
      %145 = arith.cmpi eq, %143, %144 : vector<16x16xi32>
      %c1_i32_40 = arith.constant 1 : i32
      %146 = vector.broadcast %c1_i32_40 : i32 to vector<16x16xi32>
      %147 = arith.cmpi eq, %143, %146 : vector<16x16xi32>
      %c2_i32_41 = arith.constant 2 : i32
      %148 = vector.broadcast %c2_i32_41 : i32 to vector<16x16xi32>
      %149 = arith.cmpi eq, %143, %148 : vector<16x16xi32>
      %c3_i32_42 = arith.constant 3 : i32
      %150 = vector.broadcast %c3_i32_42 : i32 to vector<16x16xi32>
      %151 = arith.cmpi eq, %143, %150 : vector<16x16xi32>
      %c4_i32_43 = arith.constant 4 : i32
      %152 = vector.broadcast %c4_i32_43 : i32 to vector<16x16xi32>
      %153 = arith.cmpi eq, %143, %152 : vector<16x16xi32>
      %154 = arith.ori %149, %151 : vector<16x16xi1>
      %155 = arith.select %153, %126, %42 : vector<16x16xi1>, vector<16x16xf32>
      %156 = arith.select %154, %116, %155 : vector<16x16xi1>, vector<16x16xf32>
      %157 = arith.select %147, %120, %156 : vector<16x16xi1>, vector<16x16xf32>
      %158 = arith.select %145, %42, %157 : vector<16x16xi1>, vector<16x16xf32>
      %159 = arith.ori %147, %149 : vector<16x16xi1>
      %160 = arith.select %151, %120, %116 : vector<16x16xi1>, vector<16x16xf32>
      %161 = arith.select %159, %42, %160 : vector<16x16xi1>, vector<16x16xf32>
      %162 = arith.select %145, %126, %161 : vector<16x16xi1>, vector<16x16xf32>
      %163 = arith.ori %145, %147 : vector<16x16xi1>
      %164 = arith.ori %151, %153 : vector<16x16xi1>
      %165 = arith.select %164, %42, %120 : vector<16x16xi1>, vector<16x16xf32>
      %166 = arith.select %149, %126, %165 : vector<16x16xi1>, vector<16x16xf32>
      %167 = arith.select %163, %116, %166 : vector<16x16xi1>, vector<16x16xf32>
      %cst_44 = arith.constant 0.000000e+00 : f32
      %cst_45 = arith.constant 2.550000e+02 : f32
      %168 = vector.broadcast %cst_44 : f32 to vector<16x16xf32>
      %169 = arith.maximumf %168, %158 : vector<16x16xf32>
      %170 = vector.broadcast %cst_45 : f32 to vector<16x16xf32>
      %171 = arith.minimumf %170, %169 : vector<16x16xf32>
      %c0_46 = arith.constant 0 : index
      %c0_47 = arith.constant 0 : index
      %c0_48 = arith.constant 0 : index
      %c0_49 = arith.constant 0 : index
      %172 = vector.load %arg6[%c0_46, %c0_47, %c0_48, %c0_49] : memref<1x3x16x16xf32, #tpu.memory_space<vmem>>, vector<1x1x16x16xf32>
      %173 = vector.shape_cast %172 : vector<1x1x16x16xf32> to vector<16x16xf32>
      %174 = vector.shape_cast %171 : vector<16x16xf32> to vector<1x1x16x16xf32>
      tpu.vector_store %arg6[%c0_46, %c0_47, %c0_48, %c0_49], %174 {strides = array<i32>} : memref<1x3x16x16xf32, #tpu.memory_space<vmem>>, vector<1x1x16x16xf32>,
      %cst_50 = arith.constant 0.000000e+00 : f32
      %cst_51 = arith.constant 2.550000e+02 : f32
      %175 = vector.broadcast %cst_50 : f32 to vector<16x16xf32>
      %176 = arith.maximumf %175, %162 : vector<16x16xf32>
      %177 = vector.broadcast %cst_51 : f32 to vector<16x16xf32>
      %178 = arith.minimumf %177, %176 : vector<16x16xf32>
      %c0_52 = arith.constant 0 : index
      %c1 = arith.constant 1 : index
      %c0_53 = arith.constant 0 : index
      %c0_54 = arith.constant 0 : index
      %179 = vector.load %arg6[%c0_52, %c1, %c0_53, %c0_54] : memref<1x3x16x16xf32, #tpu.memory_space<vmem>>, vector<1x1x16x16xf32>
      %180 = vector.shape_cast %179 : vector<1x1x16x16xf32> to vector<16x16xf32>
      %181 = vector.shape_cast %178 : vector<16x16xf32> to vector<1x1x16x16xf32>
      tpu.vector_store %arg6[%c0_52, %c1, %c0_53, %c0_54], %181 {strides = array<i32>} : memref<1x3x16x16xf32, #tpu.memory_space<vmem>>, vector<1x1x16x16xf32>,
      %cst_55 = arith.constant 0.000000e+00 : f32
      %cst_56 = arith.constant 2.550000e+02 : f32
      %182 = vector.broadcast %cst_55 : f32 to vector<16x16xf32>
      %183 = arith.maximumf %182, %167 : vector<16x16xf32>
      %184 = vector.broadcast %cst_56 : f32 to vector<16x16xf32>
      %185 = arith.minimumf %184, %183 : vector<16x16xf32>
      %c0_57 = arith.constant 0 : index
      %c2 = arith.constant 2 : index
      %c0_58 = arith.constant 0 : index
      %c0_59 = arith.constant 0 : index
      %186 = vector.load %arg6[%c0_57, %c2, %c0_58, %c0_59] : memref<1x3x16x16xf32, #tpu.memory_space<vmem>>, vector<1x1x16x16xf32>
      %187 = vector.shape_cast %186 : vector<1x1x16x16xf32> to vector<16x16xf32>
      %188 = vector.shape_cast %185 : vector<16x16xf32> to vector<1x1x16x16xf32>
      tpu.vector_store %arg6[%c0_57, %c2, %c0_58, %c0_59], %188 {strides = array<i32>} : memref<1x3x16x16xf32, #tpu.memory_space<vmem>>, vector<1x1x16x16xf32>,
    } else {
    }
    %c5_i32 = arith.constant 5 : i32
    %29 = arith.cmpi eq, %1, %c5_i32 : i32
    %30 = arith.extui %29 : i1 to i32
    %c0_i32_10 = arith.constant 0 : i32
    %31 = arith.cmpi ne, %30, %c0_i32_10 : i32
    scf.if %31 {
      %cst = arith.constant 0.00392156886 : f32
      %35 = vector.broadcast %cst : f32 to vector<3x16x16xf32>
      %36 = arith.mulf %13, %35 : vector<3x16x16xf32>
      %cst_12 = arith.constant 9.99999993E-9 : f32
      %37 = vector.broadcast %cst_12 : f32 to vector<3x16x16xf32>
      %38 = arith.maximumf %36, %37 : vector<3x16x16xf32>
      %39 = math.log %38 : vector<3x16x16xf32>
      %40 = vector.broadcast %7 : f32 to vector<3x16x16xf32>
      %41 = arith.mulf %40, %39 : vector<3x16x16xf32>
      %42 = math.exp %41 : vector<3x16x16xf32>
      %cst_13 = arith.constant 2.550000e+02 : f32
      %43 = vector.broadcast %cst_13 : f32 to vector<3x16x16xf32>
      %44 = arith.mulf %43, %42 : vector<3x16x16xf32>
      %cst_14 = arith.constant 0.000000e+00 : f32
      %cst_15 = arith.constant 2.550000e+02 : f32
      %45 = vector.broadcast %cst_14 : f32 to vector<3x16x16xf32>
      %46 = arith.maximumf %45, %44 : vector<3x16x16xf32>
      %47 = vector.broadcast %cst_15 : f32 to vector<3x16x16xf32>
      %48 = arith.minimumf %47, %46 : vector<3x16x16xf32>
      %c0_16 = arith.constant 0 : index
      %c0_17 = arith.constant 0 : index
      %c0_18 = arith.constant 0 : index
      %c0_19 = arith.constant 0 : index
      %49 = vector.load %arg6[%c0_16, %c0_17, %c0_18, %c0_19] : memref<1x3x16x16xf32, #tpu.memory_space<vmem>>, vector<1x3x16x16xf32>
      %50 = vector.shape_cast %49 : vector<1x3x16x16xf32> to vector<3x16x16xf32>
      %51 = vector.shape_cast %48 : vector<3x16x16xf32> to vector<1x3x16x16xf32>
      tpu.vector_store %arg6[%c0_16, %c0_17, %c0_18, %c0_19], %51 {strides = array<i32>} : memref<1x3x16x16xf32, #tpu.memory_space<vmem>>, vector<1x3x16x16xf32>,
    } else {
    }
    %c6_i32 = arith.constant 6 : i32
    %32 = arith.cmpi eq, %1, %c6_i32 : i32
    %33 = arith.extui %32 : i1 to i32
    %c0_i32_11 = arith.constant 0 : i32
    %34 = arith.cmpi ne, %33, %c0_i32_11 : i32
    scf.if %34 {
      %35 = vector.extract_strided_slice %13 {offsets = [0, 0, 15], sizes = [3, 16, 1], strides = [1, 1, 1]} : vector<3x16x16xf32> to vector<3x16x1xf32>
      %36 = vector.extract_strided_slice %13 {offsets = [0, 0, 0], sizes = [3, 16, 15], strides = [1, 1, 1]} : vector<3x16x16xf32> to vector<3x16x15xf32>
      %37 = tpu.concatenate %35, %36 in 2 : vector<3x16x1xf32>, vector<3x16x15xf32> -> vector<3x16x16xf32>
      %38 = arith.addf %13, %37 : vector<3x16x16xf32>
      %39 = vector.extract_strided_slice %13 {offsets = [0, 0, 1], sizes = [3, 16, 15], strides = [1, 1, 1]} : vector<3x16x16xf32> to vector<3x16x15xf32>
      %40 = vector.extract_strided_slice %13 {offsets = [0, 0, 0], sizes = [3, 16, 1], strides = [1, 1, 1]} : vector<3x16x16xf32> to vector<3x16x1xf32>
      %41 = tpu.concatenate %39, %40 in 2 : vector<3x16x15xf32>, vector<3x16x1xf32> -> vector<3x16x16xf32>
      %42 = arith.addf %38, %41 : vector<3x16x16xf32>
      %43 = vector.extract_strided_slice %42 {offsets = [0, 15, 0], sizes = [3, 1, 16], strides = [1, 1, 1]} : vector<3x16x16xf32> to vector<3x1x16xf32>
      %44 = vector.extract_strided_slice %42 {offsets = [0, 0, 0], sizes = [3, 15, 16], strides = [1, 1, 1]} : vector<3x16x16xf32> to vector<3x15x16xf32>
      %45 = tpu.concatenate %43, %44 in 1 : vector<3x1x16xf32>, vector<3x15x16xf32> -> vector<3x16x16xf32>
      %46 = arith.addf %42, %45 : vector<3x16x16xf32>
      %47 = vector.extract_strided_slice %42 {offsets = [0, 1, 0], sizes = [3, 15, 16], strides = [1, 1, 1]} : vector<3x16x16xf32> to vector<3x15x16xf32>
      %48 = vector.extract_strided_slice %42 {offsets = [0, 0, 0], sizes = [3, 1, 16], strides = [1, 1, 1]} : vector<3x16x16xf32> to vector<3x1x16xf32>
      %49 = tpu.concatenate %47, %48 in 1 : vector<3x15x16xf32>, vector<3x1x16xf32> -> vector<3x16x16xf32>
      %50 = arith.addf %46, %49 : vector<3x16x16xf32>
      %cst = arith.constant 4.000000e+00 : f32
      %51 = vector.broadcast %cst : f32 to vector<3x16x16xf32>
      %52 = arith.mulf %51, %13 : vector<3x16x16xf32>
      %53 = arith.addf %50, %52 : vector<3x16x16xf32>
      %cst_12 = arith.constant 0.0769230798 : f32
      %54 = vector.broadcast %cst_12 : f32 to vector<3x16x16xf32>
      %55 = arith.mulf %53, %54 : vector<3x16x16xf32>
      %56 = tpu.iota {dimensions = array<i32: 0>} : vector<16x16xi32>
      %57 = tpu.iota {dimensions = array<i32: 1>} : vector<16x16xi32>
      %c0_i32_13 = arith.constant 0 : i32
      %58 = vector.broadcast %c0_i32_13 : i32 to vector<16x16xi32>
      %59 = arith.cmpi sgt, %56, %58 : vector<16x16xi32>
      %c15_i32 = arith.constant 15 : i32
      %60 = vector.broadcast %c15_i32 : i32 to vector<16x16xi32>
      %61 = arith.cmpi slt, %56, %60 : vector<16x16xi32>
      %62 = arith.andi %59, %61 : vector<16x16xi1>
      %c0_i32_14 = arith.constant 0 : i32
      %63 = vector.broadcast %c0_i32_14 : i32 to vector<16x16xi32>
      %64 = arith.cmpi sgt, %57, %63 : vector<16x16xi32>
      %65 = arith.andi %62, %64 : vector<16x16xi1>
      %c15_i32_15 = arith.constant 15 : i32
      %66 = vector.broadcast %c15_i32_15 : i32 to vector<16x16xi32>
      %67 = arith.cmpi slt, %57, %66 : vector<16x16xi32>
      %68 = arith.andi %65, %67 : vector<16x16xi1>
      %69 = vector.shape_cast %68 : vector<16x16xi1> to vector<1x16x16xi1>
      %cst_16 = arith.constant 0.000000e+00 : f32
      %cst_17 = arith.constant 2.550000e+02 : f32
      %70 = vector.broadcast %cst_16 : f32 to vector<3x16x16xf32>
      %71 = arith.maximumf %70, %55 : vector<3x16x16xf32>
      %72 = vector.broadcast %cst_17 : f32 to vector<3x16x16xf32>
      %73 = arith.minimumf %72, %71 : vector<3x16x16xf32>
      %74 = vector.shape_cast %69 : vector<1x16x16xi1> to vector<1x16x16xi1>
      %75 = vector.broadcast %74 : vector<1x16x16xi1> to vector<3x16x16xi1>
      %76 = arith.select %75, %73, %13 : vector<3x16x16xi1>, vector<3x16x16xf32>
      %77 = arith.subf %13, %76 : vector<3x16x16xf32>
      %78 = vector.broadcast %7 : f32 to vector<3x16x16xf32>
      %79 = arith.mulf %78, %77 : vector<3x16x16xf32>
      %80 = arith.addf %76, %79 : vector<3x16x16xf32>
      %cst_18 = arith.constant 0.000000e+00 : f32
      %cst_19 = arith.constant 2.550000e+02 : f32
      %81 = vector.broadcast %cst_18 : f32 to vector<3x16x16xf32>
      %82 = arith.maximumf %81, %80 : vector<3x16x16xf32>
      %83 = vector.broadcast %cst_19 : f32 to vector<3x16x16xf32>
      %84 = arith.minimumf %83, %82 : vector<3x16x16xf32>
      %c0_20 = arith.constant 0 : index
      %c0_21 = arith.constant 0 : index
      %c0_22 = arith.constant 0 : index
      %c0_23 = arith.constant 0 : index
      %85 = vector.load %arg6[%c0_20, %c0_21, %c0_22, %c0_23] : memref<1x3x16x16xf32, #tpu.memory_space<vmem>>, vector<1x3x16x16xf32>
      %86 = vector.shape_cast %85 : vector<1x3x16x16xf32> to vector<3x16x16xf32>
      %87 = vector.shape_cast %84 : vector<3x16x16xf32> to vector<1x3x16x16xf32>
      tpu.vector_store %arg6[%c0_20, %c0_21, %c0_22, %c0_23], %87 {strides = array<i32>} : memref<1x3x16x16xf32, #tpu.memory_space<vmem>>, vector<1x3x16x16xf32>,
    } else {
    }
    return
  }
  func.func @transform_0(%arg0: i32, %arg1: memref<2xi32, #tpu.memory_space<smem>>, %arg2: memref<2xi32, #tpu.memory_space<smem>>, %arg3: memref<2xi32, #tpu.memory_space<smem>>, %arg4: memref<2xf32, #tpu.memory_space<smem>>) -> (i32, i32, i32, i32) {
    %c0_i32 = arith.constant 0 : i32
    %c0_i32_0 = arith.constant 0 : i32
    %c0_i32_1 = arith.constant 0 : i32
    %c0_i32_2 = arith.constant 0 : i32
    return %arg0, %c0_i32, %c0_i32_0, %c0_i32_1 : i32, i32, i32, i32
  }
  func.func @transform_1(%arg0: i32, %arg1: memref<2xi32, #tpu.memory_space<smem>>, %arg2: memref<2xi32, #tpu.memory_space<smem>>, %arg3: memref<2xi32, #tpu.memory_space<smem>>, %arg4: memref<2xf32, #tpu.memory_space<smem>>) -> (i32, i32, i32, i32) {
    %c0_i32 = arith.constant 0 : i32
    %c0_i32_0 = arith.constant 0 : i32
    %c0_i32_1 = arith.constant 0 : i32
    %c0_i32_2 = arith.constant 0 : i32
    return %arg0, %c0_i32, %c0_i32_0, %c0_i32_1 : i32, i32, i32, i32
  }
}

</mosaic_0001>

<bundles_post_ra>
// kernel: t3po_color_forward.3
= control target key start
LH: loop header
LB: loop body
LE: loop exit
PB: predicated region body
PF: predicated region fallthrough
CT: control target
= control target key end

     0   :  { %s1820_s24 = smov [#allocation3]   ;;  %s1821_s25 = smov [#allocation4]   ;;  %s2433_s0 = inlined_call_operand.vmem [shape: s32[2], index: 0, kind: input, shape index: {}]   ;;  %s2434_s4 = inlined_call_operand.vmem [shape: f32[2,3,16,16], index: 4, kind: input, shape index: {}]   ;;  %s2435_s5 = inlined_call_operand.hbm [shape: f32[2,3,16,16], index: 5, kind: output, shape index: {}]   ;;  %s2436_s1 = inlined_call_operand.vmem [shape: s32[2], index: 1, kind: input, shape index: {}]   ;;  %s2437_s2 = inlined_call_operand.vmem [shape: s32[2], index: 2, kind: input, shape index: {}]   ;;  %s2438_s3 = inlined_call_operand.vmem [shape: f32[2], index: 3, kind: input, shape index: {}]  }
   0x1   :  { %s11_s20 = sshll.u32 %s2433_s0, 4  ;;  %s16_s23 = sshll.u32 %s2436_s1, 4  ;;  %s12_s20 = int_to_ptr.vmem [resolvable:$true] %s11_s20  ;;  %s17_s23 = int_to_ptr.vmem [resolvable:$true] %s16_s23 }
   0x2   :  { %14 = dma.vmem_to_smem %s12_s20, 16, %s1820_s24, [#allocation2] }
   0x3   :  { %19 = dma.vmem_to_smem %s17_s23, 16, %s1821_s25, [#allocation2] }
   0x4   :  { %s21_s28 = sshll.u32 %s2437_s2, 4  ;;  %s26_s6 = sshll.u32 %s2438_s3, 4  ;;  %s22_s28 = int_to_ptr.vmem [resolvable:$true] %s21_s28  ;;  %s27_s6 = int_to_ptr.vmem [resolvable:$true] %s26_s6 }
   0x5   :  { %s1822_s0 = smov [#allocation5]   ;;  %s1823_s7 = smov [#allocation6]  }
   0x6   :  { %24 = dma.vmem_to_smem %s22_s28, 16, %s1822_s0, [#allocation2] }
   0x7   :  { %29 = dma.vmem_to_smem %s27_s6, 16, %s1823_s7, [#allocation2] }
   0x8   :  { %1726 = dma.done.wait [#allocation2], 64 }
   0x9   :  { %1727 = vsyncadd [#allocation2], 4294967232 }
   0xa   :  { %32 = sfence }
   0xb   :  { %33 = vsyncpa [#allocation8], 0 }
   0xc   :  { %35 = vsyncpa [#allocation8 + $0x1], 0  ;;  %s1876_s1 = smov 0   ;;  %s1878_s8 = smov 0  }
   0xd   :  { %s1880_s2 = smov 0   ;;  %s1882_s9 = smov 0  }
   0xe LB: > { %s1897_s3 = sadd.s32 4294967295, %s1746_s9   ;;  %s1249_s10 = sadd.s32 4294967294, %s1746_s9   ;;  %s1746_s9 = sphi %s1882_s9, %s2450_s9   ;;  %s1742_s2 = sphi %s1880_s2, %s2449_s2   ;;  %s1738_s8 = sphi %s1878_s8, %s2448_s8   ;;  %s1734_s1 = sphi %s1876_s1, %s2447_s1  }
   0xf   : > { %s1901_s11 = sadd.s32 1, %s1746_s9   ;;  %s74_s12 = sadd.s32 1, %s1742_s2 }
  0x10   : > { %s71_s13 = ssub.s32 %s1746_s9, %s1901_s11  ;;  %p84_p0 = scmp.ne.s32.totalorder %s1742_s2, %s1738_s8 }
  0x11   : > { %p72_p1 = scmp.eq.s32.totalorder %s71_s13, 0  ;;  %p85_p2 = scmp.eq.s32.totalorder %s1897_s3, 1 }
  0x12   : > { %p90_p3 = scmp.ne.s32.totalorder %s1738_s8, %s1734_s1  ;;  %p91_p4 = scmp.eq.s32.totalorder %s1249_s10, 1 }
  0x13   : > { %s1912_s14 = scalar_select %p72_p1, %s1742_s2, %s74_s12  }
  0x14   : > { %p1914_p5 = por %p85_p2, %p84_p0  ;;  %p1918_p6 = por %p91_p4, %p90_p3 }
  0x15   : > { %p1252_p7 = scmp.ge.s32.totalorder %s1746_s9, 1  ;;  %p117_p8 = scmp.lt.s32.totalorder %s1746_s9, 3 }
  0x17   : > { %p118_p9 = pnand %p1252_p7, %p117_p8 }
  0x18   : > { %s134_s17 = sand.u32 (!%p118_p9), 1, %s1738_s8   ;;  %p137_p10 = scmp.lt.s32.totalorder (!%p118_p9), %s1897_s3, 1 }
  0x19   : > { %121 = sbr.rel (%p118_p9) target bundleno = 1022 (0x3fe), region = 24  ;;  %s1929_s19 = sld [smem:[#allocation3 + %s1897_s3]] (!%p118_p9) }
  0x1a   : > { %s1296_s18 = smul.u32 (!%p118_p9), 48, %s134_s17  ;;  %s1933_s21 = sld [smem:[#allocation4 + %s1897_s3]] (!%p118_p9) }
  0x1b   : > { %s1936_s23 = sld [smem:[#allocation5 + %s1897_s3]] (!%p118_p9) }
  0x1c   : > { %s1939_s24 = sld [smem:[#allocation6 + %s1897_s3]] (!%p118_p9)  ;;  %s1957_s28 = scalar_lea.vmem (!%p118_p9), [#allocation7], %s1296_s18 }
  0x1e   : > { %s138_s20 = scalar_select %p137_p10, %s1897_s3, 1  ;;  %v1748_v6 = vmov 0   ;;  %v1752_v7 = vmov 0   ;;  %v1756_v8 = vmov 0   ;;  %v1760_v9 = vmov 0  }
  0x1f   : > { %v1764_v10 = vmov 0   ;;  %v1768_v11 = vmov 0  }
  0x20   : > { %s1297_s22 = smul.u32 48, %s138_s20  ;;  %p152_p11 = scmp.ne.s32.totalorder %s1933_s21, 0 }
  0x21   : > { %p1254_p12 = scmp.eq.s32.totalorder %s1933_s21, 0 }
  0x22   : > { %s141_s27 = scalar_lea.vmem %s2434_s4, %s1297_s22 }
  0x23   : > { %v1944_v0 = vld [vmem:[%s141_s27] sm:$0xff]  ;;  %v1946_v1 = vld [vmem:[%s141_s27 + $0x8] sm:$0xff]  ;;  %v1948_v2 = vld [vmem:[%s141_s27 + $0x10] sm:$0xff]  ;;  %155 = sbr.rel (%p1254_p12) target bundleno = 190 (0xbe), region = 28 }
  0x24   : > { %v1950_v3 = vld [vmem:[%s141_s27 + $0x18] sm:$0xff]  ;;  %v1952_v4 = vld [vmem:[%s141_s27 + $0x20] sm:$0xff]  ;;  %v1954_v5 = vld [vmem:[%s141_s27 + $0x28] sm:$0xff] }
  0x28   : > { %v156_v12 = vlaneseq  ;;  %v161_v13 = vstv %s1933_s21  ;;  %v1824_v18 = vmov 1.0   ;;  %vm169_vm2 = vcmask 130048  }
  0x2a   : > { %v157_v14 = vshrl.u32 %v156_v12, 7  ;;  %v160_v15 = vand.u32 127, %v156_v12 }
  0x2c   : > { %v158_v16 = vadd.s32 8, %v157_v14  ;;  %v162_v17 = vsub.s32 %v160_v15, %v161_v13 }
  0x2e   : > { %vm164_vm0 = vcmp.eq.s32.totalorder %v162_v17, %v158_v16  ;;  %vm163_vm1 = vcmp.eq.s32.totalorder %v162_v17, %v157_v14 }
  0x2f   : > { %1265 = vmatpush.msk.msra.mxu2 %vm164_vm0, %v1824_v18  ;;  %1261 = vmatpush.msk.msra.mxu1 %vm164_vm0, %v1824_v18 }
  0x30   : > { %1292 = vmatpush.msk.msra.mxu3 %vm164_vm0, %v1824_v18  ;;  %1257 = vmatpush.msk.msra.mxu0 %vm164_vm0, %v1824_v18 }
  0x31   : > { %1266 = vmatpush.msk.msra.mxu2 %vm163_vm1, %v1824_v18  ;;  %1262 = vmatpush.msk.msra.mxu1 %vm163_vm1, %v1824_v18 }
  0x32   : > { %1267 = vmatmul.msk.f32.vlgmr.msra.gmra.mxu2 %vm169_vm2, %v1952_v4  ;;  %1263 = vmatmul.msk.f32.vlgmr.msra.gmra.mxu1 %vm169_vm2, %v1948_v2 }
  0x33   : > { %1293 = vmatpush.msk.msra.mxu3 %vm163_vm1, %v1824_v18  ;;  %1258 = vmatpush.msk.msra.mxu0 %vm163_vm1, %v1824_v18 }
  0x34   : > { %1260 = vmatmul.msk.f32.vlgmr.msra.gmra.mxu3 %vm169_vm2, %v1946_v1  ;;  %1259 = vmatmul.msk.f32.vlgmr.msra.gmra.mxu0 %vm169_vm2, %v1944_v0 }
  0x3a   : > { %1268 = vmatmul.msk.f32.gmra.mxu2 %vm169_vm2, %v1954_v5  ;;  %1264 = vmatmul.msk.f32.gmra.mxu1 %vm169_vm2, %v1950_v3 }
  0xaf   : > { %v222_v9 = vpop.f32.mrf.mxu1  }
  0xb1   : > { %v193_v11 = vpop.f32.mrf.mxu0  }
  0xb5   : > { %v251_v7 = vpop.f32.mrf.mxu2  }
  0xb7   : > { %v196_v10 = vpop.f32.mrf.mxu3   ;;  %v225_v8 = vpop.f32.mrf.mxu1  }
  0xbd   : > { %v254_v6 = vpop.f32.mrf.mxu2  }
  0xbe PF: > { %265 = sbr.rel (%p152_p11) target bundleno = 354 (0x162), region = 32  ;;  %p1269_p13 = scmp.eq.s32.totalorder (!%p152_p11), %s1936_s23, 0  ;;  %v1770_v11 = vphi %v1768_v11, %v193_v11   ;;  %v1766_v10 = vphi %v1764_v10, %v196_v10   ;;  %v1762_v9 = vphi %v1760_v9, %v222_v9   ;;  %v1758_v8 = vphi %v1756_v8, %v225_v8   ;;  %v1754_v7 = vphi %v1752_v7, %v251_v7   ;;  %v1750_v6 = vphi %v1748_v6, %v254_v6  }
  0xc3   : > { %v1772_v19 = vmov 0   ;;  %v1776_v20 = vmov 0   ;;  %v1780_v21 = vmov 0   ;;  %v1784_v22 = vmov 0   ;;  %269 = sbr.rel (%p1269_p13) target bundleno = 348 (0x15c), region = 36 }
  0xc4   : > { %v1788_v23 = vmov 0   ;;  %v1792_v24 = vmov 0  }
  0xc8   : > { %351 = vmatpush.msra.mxu2 %v1954_v5  ;;  %v270_v25 = vlaneseq  ;;  %328 = vmatpush.msra.mxu1 %v1950_v3  ;;  %v275_v26 = vstv %s1936_s23  ;;  %vm284_vm3 = vcmask 130048   ;;  %v1825_v32 = vmov 0.0  }
  0xc9   : > { %1294 = vmatpush.msra.mxu3 %v1946_v1  ;;  %305 = vmatpush.msra.mxu0 %v1946_v1 }
  0xca   : > { %352 = vmatpush.msra.mxu2 %v1952_v4  ;;  %v271_v27 = vshrl.u32 %v270_v25, 7  ;;  %v274_v28 = vand.u32 127, %v270_v25  ;;  %329 = vmatpush.msra.mxu1 %v1948_v2 }
  0xcb   : > { %1295 = vmatpush.msra.mxu3 %v1944_v0  ;;  %306 = vmatpush.msra.mxu0 %v1944_v0 }
  0xcc   : > { %v276_v29 = vsub.s32 %v271_v27, %v275_v26  ;;  %v272_v30 = vadd.s32 8, %v271_v27 }
  0xce   : > { %vm278_vm4 = vcmp.eq.s32.totalorder %v276_v29, %v274_v28  ;;  %v277_v31 = vsub.s32 %v272_v30, %v275_v26 }
  0xcf   : > { %v1270_v33 = vsel %vm278_vm4, 1.0, %v1825_v32 }
  0xd0   : > { %1276 = vmatmul.msk.f32.vlgmr.msra.gmra.mxu2 %vm284_vm3, %v1270_v33  ;;  %1274 = vmatmul.msk.f32.vlgmr.msra.gmra.mxu1 %vm284_vm3, %v1270_v33  ;;  %vm279_vm5 = vcmp.eq.s32.totalorder %v277_v31, %v274_v28 }
  0xd1   : > { %v1271_v34 = vsel %vm279_vm5, 1.0, %v1825_v32  ;;  %1272 = vmatmul.msk.f32.vlgmr.msra.gmra.mxu0 %vm284_vm3, %v1270_v33 }
  0xd2   : > { %1273 = vmatmul.msk.f32.vlgmr.msra.gmra.mxu3 %vm284_vm3, %v1271_v34 }
  0xd8   : > { %1277 = vmatmul.msk.f32.gmra.mxu2 %vm284_vm3, %v1271_v34  ;;  %1275 = vmatmul.msk.f32.gmra.mxu1 %vm284_vm3, %v1271_v34 }
 0x14d   : > { %v331_v22 = vpop.f32.mrf.mxu1  }
 0x14e   : > { %v308_v24 = vpop.f32.mrf.mxu0  }
 0x153   : > { %v354_v20 = vpop.f32.mrf.mxu2  }
 0x155   : > { %v311_v23 = vpop.f32.mrf.mxu3   ;;  %v334_v21 = vpop.f32.mrf.mxu1  }
 0x15b   : > { %v357_v19 = vpop.f32.mrf.mxu2  }
 0x15c PF: > { %s1306_s29 = scalar_select %p1269_p13, 1, 0  ;;  %v1794_v24 = vphi %v1792_v24, %v308_v24   ;;  %v1790_v23 = vphi %v1788_v23, %v311_v23   ;;  %v1786_v22 = vphi %v1784_v22, %v331_v22   ;;  %v1782_v21 = vphi %v1780_v21, %v334_v21   ;;  %v1778_v20 = vphi %v1776_v20, %v354_v20   ;;  %v1774_v19 = vphi %v1772_v19, %v357_v19  }
 0x15e   : > { %v1307_v35 = vstv %s1306_s29 }
 0x15f   : > { %vm1308_vm6 = vcmp.ne.s32.totalorder %v1307_v35, 0 }
 0x160   : > { %v1309_v11 = vsel %vm1308_vm6, %v1944_v0, %v1794_v24   ;;  %v1313_v10 = vsel %vm1308_vm6, %v1946_v1, %v1790_v23   ;;  %v1317_v9 = vsel %vm1308_vm6, %v1948_v2, %v1786_v22   ;;  %v1321_v8 = vsel %vm1308_vm6, %v1950_v3, %v1782_v21  }
 0x161   : > { %v1325_v7 = vsel %vm1308_vm6, %v1952_v4, %v1778_v20   ;;  %v1329_v6 = vsel %vm1308_vm6, %v1954_v5, %v1774_v19  }
 0x162 PF: > { %p1278_p0 = scmp.ne.s32.totalorder %s1929_s19, 0  ;;  %v1818_v11 = vphi %v1770_v11, %v1309_v11   ;;  %v1814_v10 = vphi %v1766_v10, %v1313_v10   ;;  %v1810_v9 = vphi %v1762_v9, %v1317_v9   ;;  %v1806_v8 = vphi %v1758_v8, %v1321_v8   ;;  %v1802_v7 = vphi %v1754_v7, %v1325_v7   ;;  %v1798_v6 = vphi %v1750_v6, %v1329_v6  }
 0x164   : > { %384 = sbr.rel (%p1278_p0) target bundleno = 368 (0x170), region = 44 }
 0x169   : > { %vm385_vm7 = vcmask 130048  }
 0x16a   : > { %386 = vst.msk [vmem:[%s1957_s28] sm:$0xff] %vm385_vm7, %v1818_v11 }
 0x16b   : > { %387 = vst.msk [vmem:[%s1957_s28 + $0x8] sm:$0xff] %vm385_vm7, %v1814_v10 }
 0x16c   : > { %388 = vst.msk [vmem:[%s1957_s28 + $0x10] sm:$0xff] %vm385_vm7, %v1810_v9 }
 0x16d   : > { %389 = vst.msk [vmem:[%s1957_s28 + $0x18] sm:$0xff] %vm385_vm7, %v1806_v8 }
 0x16e   : > { %390 = vst.msk [vmem:[%s1957_s28 + $0x20] sm:$0xff] %vm385_vm7, %v1802_v7 }
 0x16f   : > { %391 = vst.msk [vmem:[%s1957_s28 + $0x28] sm:$0xff] %vm385_vm7, %v1798_v6 }
 0x170 PF: > { %p1279_p1 = scmp.ne.s32.totalorder %s1929_s19, 1 }
 0x172   : > { %395 = sbr.rel (%p1279_p1) target bundleno = 388 (0x184), region = 48 }
 0x177   : > { %v396_v36 = vstv %s1939_s24  ;;  %vm415_vm8 = vcmask 130048  }
 0x178   : > { %v397_v37 = vmul.f32 %v1818_v11, %v396_v36  ;;  %v398_v38 = vmul.f32 %v1814_v10, %v396_v36  ;;  %v399_v39 = vmul.f32 %v1810_v9, %v396_v36  ;;  %v400_v40 = vmul.f32 %v1806_v8, %v396_v36 }
 0x179   : > { %v401_v41 = vmul.f32 %v1802_v7, %v396_v36  ;;  %v402_v42 = vmul.f32 %v1798_v6, %v396_v36 }
 0x17a   : > { %v403_v43 = vmax.f32 %v397_v37, 0.0  ;;  %v404_v44 = vmax.f32 %v398_v38, 0.0  ;;  %v405_v45 = vmax.f32 %v399_v39, 0.0  ;;  %v406_v46 = vmax.f32 %v400_v40, 0.0 }
 0x17b   : > { %v407_v47 = vmax.f32 %v401_v41, 0.0  ;;  %v408_v48 = vmax.f32 %v402_v42, 0.0 }
 0x17c   : > { %v409_v49 = vmin.f32 %v403_v43, 255.0  ;;  %v410_v50 = vmin.f32 %v404_v44, 255.0  ;;  %v411_v51 = vmin.f32 %v405_v45, 255.0  ;;  %v412_v52 = vmin.f32 %v406_v46, 255.0 }
 0x17d   : > { %v413_v53 = vmin.f32 %v407_v47, 255.0  ;;  %v414_v54 = vmin.f32 %v408_v48, 255.0 }
 0x17e   : > { %416 = vst.msk [vmem:[%s1957_s28] sm:$0xff] %vm415_vm8, %v409_v49 }
 0x17f   : > { %417 = vst.msk [vmem:[%s1957_s28 + $0x8] sm:$0xff] %vm415_vm8, %v410_v50 }
 0x180   : > { %418 = vst.msk [vmem:[%s1957_s28 + $0x10] sm:$0xff] %vm415_vm8, %v411_v51 }
 0x181   : > { %419 = vst.msk [vmem:[%s1957_s28 + $0x18] sm:$0xff] %vm415_vm8, %v412_v52 }
 0x182   : > { %420 = vst.msk [vmem:[%s1957_s28 + $0x20] sm:$0xff] %vm415_vm8, %v413_v53 }
 0x183   : > { %421 = vst.msk [vmem:[%s1957_s28 + $0x28] sm:$0xff] %vm415_vm8, %v414_v54 }
 0x184 PF: > { %p1280_p2 = scmp.ne.s32.totalorder %s1929_s19, 2 }
 0x185   : > { %s450_s30 = ssub.f32 (!%p1280_p2), 1.0, %s1939_s24 }
 0x186   : > { %425 = sbr.rel (%p1280_p2) target bundleno = 600 (0x258), region = 52 }
 0x18b   : > { %v426_v55 = vmul.f32 0.299, %v1818_v11  ;;  %v427_v56 = vmul.f32 0.299, %v1814_v10  ;;  %v428_v57 = vmul.f32 0.587, %v1810_v9  ;;  %v452_v17 = vstv %s1939_s24 }
 0x18c   : > { %v429_v58 = vmul.f32 0.587, %v1806_v8  ;;  %v432_v59 = vmul.f32 0.114, %v1802_v7  ;;  %v433_v60 = vmul.f32 0.114, %v1798_v6  ;;  %v453_v18 = vmul.f32 %v1818_v11, %v452_v17 }
 0x18d   : > { %v430_v61 = vadd.f32 %v428_v57, %v426_v55  ;;  %vm436_vm9 = vcmask 130048   ;;  %v454_v19 = vmul.f32 %v1814_v10, %v452_v17  ;;  %v455_v20 = vmul.f32 %v1810_v9, %v452_v17 }
 0x18e   : > { %v431_v62 = vadd.f32 %v429_v58, %v427_v56  ;;  %v456_v21 = vmul.f32 %v1806_v8, %v452_v17  ;;  %v457_v22 = vmul.f32 %v1802_v7, %v452_v17  ;;  %v458_v23 = vmul.f32 %v1798_v6, %v452_v17 }
 0x18f   : > { %v434_v63 = vadd.f32 %v432_v59, %v430_v61 }
 0x190   : > { %v435_v0 = vadd.f32 %v433_v60, %v431_v62 }
 0x191   : > { %v437_v1 = vsel %vm436_vm9, %v434_v63, 0.0 }
 0x192   : > { %v438_v2 = vsel %vm436_vm9, %v435_v0, 0.0 }
 0x193   : > { %v439_v3 = vadd.f32 %v438_v2, %v437_v1 }
 0x195   : > { %440 = vadd.xlane.f32.xlu0 %v439_v3 }
 0x208   : > { %v441_v4 = vpop.xlane.xlu0 %440 }
 0x209   : > { %v442_v5 = vrot.slane %v441_v4, 4 }
 0x20b   : > { %v443_v12 = vadd.f32 %v442_v5, %v441_v4 }
 0x20d   : > { %v444_v13 = vrot.slane %v443_v12, 2 }
 0x20f   : > { %v445_v14 = vadd.f32 %v444_v13, %v443_v12 }
 0x211   : > { %v446_v15 = vrot.slane %v445_v14, 1 }
 0x213   : > { %v447_v16 = vadd.f32 %v446_v15, %v445_v14 }
 0x215   : > { %1298 = vpush %v447_v16 }
 0x246   : > { %s1299_s6 = spop %1298 }
 0x247   : > { %s449_s0 = smul.f32 0.00390625, %s1299_s6 }
 0x249   : > { %s451_s7 = smul.f32 %s450_s30, %s449_s0 }
 0x24b   : > { %v459_v24 = vstv %s451_s7 }
 0x24c   : > { %v460_v25 = vadd.f32 %v459_v24, %v453_v18  ;;  %v461_v26 = vadd.f32 %v459_v24, %v454_v19  ;;  %v462_v27 = vadd.f32 %v459_v24, %v455_v20  ;;  %v463_v28 = vadd.f32 %v459_v24, %v456_v21 }
 0x24d   : > { %v464_v29 = vadd.f32 %v459_v24, %v457_v22  ;;  %v465_v30 = vadd.f32 %v459_v24, %v458_v23 }
 0x24e   : > { %v466_v31 = vmax.f32 %v460_v25, 0.0  ;;  %v467_v32 = vmax.f32 %v461_v26, 0.0  ;;  %v468_v33 = vmax.f32 %v462_v27, 0.0  ;;  %v469_v34 = vmax.f32 %v463_v28, 0.0 }
 0x24f   : > { %v470_v35 = vmax.f32 %v464_v29, 0.0  ;;  %v471_v36 = vmax.f32 %v465_v30, 0.0 }
 0x250   : > { %v472_v37 = vmin.f32 %v466_v31, 255.0  ;;  %v473_v38 = vmin.f32 %v467_v32, 255.0  ;;  %v474_v39 = vmin.f32 %v468_v33, 255.0  ;;  %v475_v40 = vmin.f32 %v469_v34, 255.0 }
 0x251   : > { %v476_v41 = vmin.f32 %v470_v35, 255.0  ;;  %v477_v42 = vmin.f32 %v471_v36, 255.0 }
 0x252   : > { %478 = vst.msk [vmem:[%s1957_s28] sm:$0xff] %vm436_vm9, %v472_v37 }
 0x253   : > { %479 = vst.msk [vmem:[%s1957_s28 + $0x8] sm:$0xff] %vm436_vm9, %v473_v38 }
 0x254   : > { %480 = vst.msk [vmem:[%s1957_s28 + $0x10] sm:$0xff] %vm436_vm9, %v474_v39 }
 0x255   : > { %481 = vst.msk [vmem:[%s1957_s28 + $0x18] sm:$0xff] %vm436_vm9, %v475_v40 }
 0x256   : > { %482 = vst.msk [vmem:[%s1957_s28 + $0x20] sm:$0xff] %vm436_vm9, %v476_v41 }
 0x257   : > { %483 = vst.msk [vmem:[%s1957_s28 + $0x28] sm:$0xff] %vm436_vm9, %v477_v42 }
 0x258 PF: > { %p1281_p3 = scmp.ne.s32.totalorder %s1929_s19, 3 }
 0x259   : > { %s498_s10 = ssub.f32 (!%p1281_p3), 1.0, %s1939_s24 }
 0x25a   : > { %487 = sbr.rel (%p1281_p3) target bundleno = 627 (0x273), region = 56 }
 0x25f   : > { %v488_v43 = vmul.f32 0.299, %v1818_v11  ;;  %v490_v44 = vmul.f32 0.587, %v1810_v9  ;;  %v494_v45 = vmul.f32 0.114, %v1802_v7  ;;  %v502_v46 = vstv %s1939_s24 }
 0x260   : > { %v489_v47 = vmul.f32 0.299, %v1814_v10  ;;  %v491_v48 = vmul.f32 0.587, %v1806_v8  ;;  %v495_v50 = vmul.f32 0.114, %v1798_v6  ;;  %v499_v51 = vstv %s498_s10 }
 0x261   : > { %v492_v49 = vadd.f32 %v490_v44, %v488_v43  ;;  %v503_v54 = vmul.f32 %v1818_v11, %v502_v46  ;;  %v505_v55 = vmul.f32 %v1810_v9, %v502_v46  ;;  %v507_v56 = vmul.f32 %v1802_v7, %v502_v46 }
 0x262   : > { %v493_v52 = vadd.f32 %v491_v48, %v489_v47  ;;  %v504_v58 = vmul.f32 %v1814_v10, %v502_v46  ;;  %v506_v59 = vmul.f32 %v1806_v8, %v502_v46  ;;  %v508_v60 = vmul.f32 %v1798_v6, %v502_v46 }
 0x263   : > { %v496_v53 = vadd.f32 %v494_v45, %v492_v49  ;;  %vm527_vm10 = vcmask 130048  }
 0x264   : > { %v497_v57 = vadd.f32 %v495_v50, %v493_v52 }
 0x265   : > { %v500_v61 = vmul.f32 %v499_v51, %v496_v53 }
 0x266   : > { %v501_v62 = vmul.f32 %v499_v51, %v497_v57 }
 0x267   : > { %v509_v63 = vadd.f32 %v503_v54, %v500_v61  ;;  %v511_v0 = vadd.f32 %v505_v55, %v500_v61  ;;  %v513_v1 = vadd.f32 %v507_v56, %v500_v61 }
 0x268   : > { %v510_v2 = vadd.f32 %v504_v58, %v501_v62  ;;  %v512_v3 = vadd.f32 %v506_v59, %v501_v62  ;;  %v514_v4 = vadd.f32 %v508_v60, %v501_v62 }
 0x269   : > { %v515_v5 = vmax.f32 %v509_v63, 0.0  ;;  %v517_v12 = vmax.f32 %v511_v0, 0.0  ;;  %v519_v13 = vmax.f32 %v513_v1, 0.0 }
 0x26a   : > { %v516_v14 = vmax.f32 %v510_v2, 0.0  ;;  %v518_v15 = vmax.f32 %v512_v3, 0.0  ;;  %v520_v16 = vmax.f32 %v514_v4, 0.0 }
 0x26b   : > { %v521_v17 = vmin.f32 %v515_v5, 255.0  ;;  %v523_v18 = vmin.f32 %v517_v12, 255.0  ;;  %v525_v21 = vmin.f32 %v519_v13, 255.0 }
 0x26c   : > { %v522_v19 = vmin.f32 %v516_v14, 255.0  ;;  %v524_v20 = vmin.f32 %v518_v15, 255.0  ;;  %v526_v22 = vmin.f32 %v520_v16, 255.0 }
 0x26d   : > { %528 = vst.msk [vmem:[%s1957_s28] sm:$0xff] %vm527_vm10, %v521_v17 }
 0x26e   : > { %529 = vst.msk [vmem:[%s1957_s28 + $0x8] sm:$0xff] %vm527_vm10, %v522_v19 }
 0x26f   : > { %530 = vst.msk [vmem:[%s1957_s28 + $0x10] sm:$0xff] %vm527_vm10, %v523_v18 }
 0x270   : > { %531 = vst.msk [vmem:[%s1957_s28 + $0x18] sm:$0xff] %vm527_vm10, %v524_v20 }
 0x271   : > { %532 = vst.msk [vmem:[%s1957_s28 + $0x20] sm:$0xff] %vm527_vm10, %v525_v21 }
 0x272   : > { %533 = vst.msk [vmem:[%s1957_s28 + $0x28] sm:$0xff] %vm527_vm10, %v526_v22 }
 0x273 PF: > { %p1282_p4 = scmp.ne.s32.totalorder %s1929_s19, 4 }
 0x275   : > { %537 = sbr.rel (%p1282_p4) target bundleno = 750 (0x2ee), region = 60 }
 0x27a   : > { %v538_v23 = vmax.f32 %v1818_v11, %v1810_v9  ;;  %v542_v24 = vmin.f32 %v1818_v11, %v1810_v9  ;;  %v539_v25 = vmax.f32 %v1814_v10, %v1806_v8  ;;  %v543_v26 = vmin.f32 %v1814_v10, %v1806_v8 }
 0x27b   : > { %v1826_v30 = vmov 1.0  }
 0x27c   : > { %v2118_v27 = vmax.f32 %v538_v23, %v1802_v7  ;;  %v544_v28 = vmin.f32 %v542_v24, %v1802_v7  ;;  %v2122_v29 = vmax.f32 %v539_v25, %v1798_v6  ;;  %1528 = vrcp.f32 %v1826_v30 }
 0x27d   : > { %v545_v31 = vmin.f32 %v543_v26, %v1798_v6 }
 0x27e   : > { %v2126_v32 = vsub.f32 %v2118_v27, %v544_v28  ;;  %v564_v37 = vsub.f32 %v2118_v27, %v1818_v11  ;;  %v568_v38 = vsub.f32 %v2118_v27, %v1810_v9  ;;  %v572_v39 = vsub.f32 %v2118_v27, %v1802_v7 }
 0x27f   : > { %v2130_v33 = vsub.f32 %v2122_v29, %v545_v31  ;;  %v565_v41 = vsub.f32 %v2122_v29, %v1814_v10  ;;  %v569_v43 = vsub.f32 %v2122_v29, %v1806_v8  ;;  %v573_v44 = vsub.f32 %v2122_v29, %v1798_v6 }
 0x280   : > { %vm548_vm11 = vcmp.gt.f32.partialorder %v2126_v32, 1e-05  ;;  %vm580_vm13 = vcmp.eq.f32.partialorder %v1810_v9, %v2118_v27  ;;  %vm576_vm14 = vcmp.eq.f32.partialorder %v1818_v11, %v2118_v27  ;;  %vm581_vm0 = vcmp.eq.f32.partialorder %v1806_v8, %v2122_v29 }
 0x281   : > { %v560_v34 = vsel %vm548_vm11, %v2126_v32, 1.0  ;;  %vm549_vm12 = vcmp.gt.f32.partialorder %v2130_v33, 1e-05  ;;  %vm577_vm1 = vcmp.eq.f32.partialorder %v1814_v10, %v2122_v29  ;;  %v638_v31 = vstv %s1939_s24 }
 0x282   : > { %1530 = vrcp.f32 %v560_v34  ;;  %v1529_v35 = vpop.eup %1528  ;;  %v561_v36 = vsel %vm549_vm12, %v2130_v33, 1.0 }
 0x283   : > { %1532 = vrcp.f32 %v561_v36  ;;  %v598_v40 = vsub.f32 1.0, %v1529_v35  ;;  %vm601_vm15 = vweird.f32 %v1529_v35 }
 0x285   : > { %v599_v49 = vmul.f32 %v1529_v35, %v598_v40 }
 0x287   : > { %v600_v59 = vadd.f32 %v1529_v35, %v599_v49 }
 0x288   : > { %v1531_v42 = vpop.eup %1530 }
 0x289   : > { %v566_v45 = vmul.f32 %v1531_v42, %v564_v37  ;;  %v570_v46 = vmul.f32 %v1531_v42, %v568_v38  ;;  %v574_v47 = vmul.f32 %v1531_v42, %v572_v39  ;;  %v1533_v48 = vpop.eup %1532  ;;  %v602_v3 = vsel %vm601_vm15, %v1529_v35, %v600_v59 }
 0x28a   : > { %v567_v52 = vmul.f32 %v1533_v48, %v565_v41  ;;  %v571_v54 = vmul.f32 %v1533_v48, %v569_v43  ;;  %v575_v55 = vmul.f32 %v1533_v48, %v573_v44 }
 0x28b   : > { %v582_v50 = vadd.f32 2.0, %v566_v45  ;;  %v586_v51 = vadd.f32 4.0, %v570_v46  ;;  %v578_v53 = vsub.f32 %v574_v47, %v570_v46 }
 0x28c   : > { %v583_v58 = vadd.f32 2.0, %v567_v52  ;;  %v587_v60 = vadd.f32 4.0, %v571_v54  ;;  %v579_v62 = vsub.f32 %v575_v55, %v571_v54 }
 0x28d   : > { %v584_v56 = vsub.f32 %v582_v50, %v574_v47  ;;  %v588_v57 = vsub.f32 %v586_v51, %v566_v45 }
 0x28e   : > { %v585_v63 = vsub.f32 %v583_v58, %v575_v55  ;;  %v589_v1 = vsub.f32 %v587_v60, %v567_v52 }
 0x28f   : > { %v590_v61 = vsel %vm580_vm13, %v584_v56, %v588_v57 }
 0x290   : > { %v592_v0 = vsel %vm576_vm14, %v578_v53, %v590_v61  ;;  %v591_v4 = vsel %vm581_vm0, %v585_v63, %v589_v1 }
 0x291   : > { %v594_v2 = vmul.f32 0.16666667, %v592_v0  ;;  %v593_v12 = vsel %vm577_vm1, %v579_v62, %v591_v4 }
 0x292   : > { %v595_v13 = vmul.f32 0.16666667, %v593_v12 }
 0x293   : > { %v596_v5 = vand.u32 2147483647, %v594_v2  ;;  %v609_v20 = vand.u32 2147483648, %v594_v2  ;;  %v550_v2 = vmax.f32 %v2118_v27, 1e-05 }
 0x294   : > { %v611_v15 = vand.u32 2147483647, %v595_v13  ;;  %v624_v24 = vand.u32 2147483648, %v595_v13 }
 0x295   : > { %v603_v14 = vmul.f32 %v602_v3, %v596_v5  ;;  %1534 = vrcp.f32 %v550_v2 }
 0x296   : > { %v618_v17 = vmul.f32 %v611_v15, %v602_v3 }
 0x297   : > { %v604_v16 = vfloor.f32 %v603_v14 }
 0x298   : > { %v619_v19 = vfloor.f32 %v618_v17 }
 0x299   : > { %v605_v18 = vsub.f32 %v596_v5, %v604_v16 }
 0x29a   : > { %v620_v22 = vsub.f32 %v611_v15, %v619_v19 }
 0x29b   : > { %vm606_vm2 = vcmp.eq.f32.partialorder %v605_v18, 1.0 }
 0x29c   : > { %v607_v21 = vsel %vm606_vm2, 0.0, %v605_v18  ;;  %vm621_vm3 = vcmp.eq.f32.partialorder %v620_v22, 1.0  ;;  %v551_v18 = vmax.f32 %v2122_v29, 1e-05 }
 0x29d   : > { %v608_v23 = vand.u32 2147483647, %v607_v21  ;;  %v622_v26 = vsel %vm621_vm3, 0.0, %v620_v22 }
 0x29e   : > { %v623_v28 = vand.u32 2147483647, %v622_v26  ;;  %v1827_v26 = vmov 0   ;;  %1536 = vrcp.f32 %v551_v18 }
 0x29f   : > { %v610_v25 = vor.u32 %v609_v20, %v608_v23  ;;  %v1535_v23 = vpop.eup %1534 }
 0x2a0   : > { %v625_v34 = vor.u32 %v624_v24, %v623_v28 }
 0x2a1   : > { %vm626_vm4 = vcmp.ne.f32.partialorder %v610_v25, 0.0  ;;  %vm628_vm5 = vcmp.lt.f32.partialorder %v610_v25, 0.0  ;;  %v632_v30 = vadd.f32 1.0, %v610_v25 }
 0x2a2   : > { %vm630_vm6 = vmand %vm628_vm5, %vm626_vm4  ;;  %vm627_vm7 = vcmp.ne.f32.partialorder %v625_v34, 0.0  ;;  %vm629_vm8 = vcmp.lt.f32.partialorder %v625_v34, 0.0  ;;  %v633_v37 = vadd.f32 1.0, %v625_v34  ;;  %vm554_vm4 = vcmp.gt.f32.partialorder %v2118_v27, 1e-05 }
 0x2a3   : > { %v634_v35 = vsel %vm630_vm6, %v632_v30, %v610_v25  ;;  %vm631_vm9 = vmand %vm629_vm8, %vm627_vm7 }
 0x2a4   : > { %v636_v36 = vsel %vm548_vm11, %v634_v35, 0.0  ;;  %v635_v39 = vsel %vm631_vm9, %v633_v37, %v625_v34  ;;  %vm555_vm9 = vcmp.gt.f32.partialorder %v2122_v29, 1e-05 }
 0x2a5   : > { %v639_v38 = vadd.f32 %v638_v31, %v636_v36  ;;  %v637_v41 = vsel %vm549_vm12, %v635_v39, 0.0  ;;  %v556_v36 = vmul.f32 %v1535_v23, %v2126_v32 }
 0x2a6   : > { %v640_v42 = vadd.f32 %v638_v31, %v637_v41 }
 0x2a7   : > { %v641_v40 = vand.u32 2147483647, %v639_v38  ;;  %v654_v49 = vand.u32 2147483648, %v639_v38 }
 0x2a8   : > { %v656_v44 = vand.u32 2147483647, %v640_v42  ;;  %v669_v53 = vand.u32 2147483648, %v640_v42 }
 0x2a9   : > { %v648_v43 = vmul.f32 %v641_v40, %v602_v3 }
 0x2aa   : > { %v663_v46 = vmul.f32 %v656_v44, %v602_v3 }
 0x2ab   : > { %v649_v45 = vfloor.f32 %v648_v43 }
 0x2ac   : > { %v664_v48 = vfloor.f32 %v663_v46 }
 0x2ad   : > { %v650_v47 = vsub.f32 %v641_v40, %v649_v45 }
 0x2ae   : > { %v665_v51 = vsub.f32 %v656_v44, %v664_v48  ;;  %v1537_v48 = vpop.eup %1536 }
 0x2af   : > { %vm651_vm10 = vcmp.eq.f32.partialorder %v650_v47, 1.0 }
 0x2b0   : > { %v652_v50 = vsel %vm651_vm10, 0.0, %v650_v47  ;;  %vm666_vm11 = vcmp.eq.f32.partialorder %v665_v51, 1.0 }
 0x2b1   : > { %v653_v52 = vand.u32 2147483647, %v652_v50  ;;  %v667_v55 = vsel %vm666_vm11, 0.0, %v665_v51 }
 0x2b2   : > { %v668_v56 = vand.u32 2147483647, %v667_v55 }
 0x2b3   : > { %v655_v54 = vor.u32 %v654_v49, %v653_v52  ;;  %v558_v49 = vsel %vm554_vm4, %v556_v36, 0.0 }
 0x2b4   : > { %v670_v58 = vor.u32 %v669_v53, %v668_v56  ;;  %v687_v2 = vsub.f32 1.0, %v558_v49 }
 0x2b5   : > { %vm671_vm13 = vcmp.ne.f32.partialorder %v655_v54, 0.0  ;;  %vm673_vm14 = vcmp.lt.f32.partialorder %v655_v54, 0.0  ;;  %v677_v57 = vadd.f32 1.0, %v655_v54 }
 0x2b6   : > { %vm675_vm12 = vmand %vm673_vm14, %vm671_vm13  ;;  %vm672_vm15 = vcmp.ne.f32.partialorder %v670_v58, 0.0  ;;  %vm674_vm0 = vcmp.lt.f32.partialorder %v670_v58, 0.0  ;;  %v678_v61 = vadd.f32 1.0, %v670_v58 }
 0x2b7   : > { %v679_v59 = vsel %vm675_vm12, %v677_v57, %v655_v54  ;;  %vm676_vm1 = vmand %vm674_vm0, %vm672_vm15  ;;  %v557_v57 = vmul.f32 %v1537_v48, %v2130_v33 }
 0x2b8   : > { %v681_v60 = vmul.f32 6.0, %v679_v59  ;;  %v680_v63 = vsel %vm676_vm1, %v678_v61, %v670_v58 }
 0x2b9   : > { %v2166_v1 = vmul.f32 6.0, %v680_v63 }
 0x2ba   : > { %v683_v62 = vfloor.f32 %v681_v60 }
 0x2bb   : > { %v684_v4 = vfloor.f32 %v2166_v1 }
 0x2bc   : > { %v2164_v0 = vcvt.f32.s32 %v683_v62  ;;  %v685_v37 = vsub.f32 %v681_v60, %v683_v62 }
 0x2bd   : > { %v2175_v14 = vcvt.f32.s32 %v684_v4  ;;  %v686_v63 = vsub.f32 %v2166_v1, %v684_v4 }
 0x2be   : > { %vm707_vm2 = vcmp.lt.s32.totalorder %v2164_v0, 0  ;;  %v708_v3 = vsub.s32 0, %v2164_v0  ;;  %v697_v50 = vsub.f32 1.0, %v685_v37  ;;  %v691_v56 = vmul.f32 %v685_v37, %v558_v49 }
 0x2bf   : > { %vm736_vm3 = vcmp.lt.s32.totalorder %v2175_v14, 0  ;;  %v737_v22 = vsub.s32 0, %v2175_v14 }
 0x2c0   : > { %v709_v5 = vsel %vm707_vm2, %v708_v3, %v2164_v0  ;;  %v699_v59 = vmul.f32 %v697_v50, %v558_v49 }
 0x2c1   : > { %v710_v12 = vand.u32 65535, %v709_v5  ;;  %v711_v13 = vshrl.u32 %v709_v5, 16  ;;  %v2184_v30 = vsel %vm736_vm3, %v737_v22, %v2175_v14 }
 0x2c2   : > { %v739_v34 = vand.u32 65535, %v2184_v30  ;;  %v740_v35 = vshrl.u32 %v2184_v30, 16 }
 0x2c3   : > { %v713_v15 = vmul.u32 43691, %v710_v12  ;;  %v714_v16 = vmul.u32 43690, %v710_v12  ;;  %v715_v17 = vmul.u32 43691, %v711_v13  ;;  %v716_v19 = vmul.u32 43690, %v711_v13 }
 0x2c4   : > { %v742_v41 = vmul.u32 43691, %v739_v34  ;;  %v743_v42 = vmul.u32 43690, %v739_v34  ;;  %v744_v43 = vmul.u32 43691, %v740_v35  ;;  %v745_v45 = vmul.u32 43690, %v740_v35 }
 0x2c5   : > { %v717_v20 = vshll.u32 %v714_v16, 16  ;;  %v719_v21 = vshll.u32 %v715_v17, 16  ;;  %v718_v25 = vshrl.u32 %v714_v16, 16  ;;  %v720_v38 = vshrl.u32 %v715_v17, 16 }
 0x2c6   : > { %v746_v46 = vshll.u32 %v743_v42, 16  ;;  %v748_v47 = vshll.u32 %v744_v43, 16  ;;  %v747_v54 = vshrl.u32 %v743_v42, 16  ;;  %v749_v61 = vshrl.u32 %v744_v43, 16 }
 0x2c7   : > { %vm721_vm5 = vc.u32 %v713_v15, %v717_v20  ;;  %v723_v24 = vadd.s32 %v717_v20, %v713_v15  ;;  %v693_v13 = vsub.f32 1.0, %v691_v56  ;;  %v559_v15 = vsel %vm555_vm9, %v557_v57, 0.0 }
 0x2c8   : > { %v722_v28 = vsel %vm721_vm5, 1, %v1827_v26  ;;  %vm750_vm7 = vc.u32 %v742_v41, %v746_v46  ;;  %v752_v52 = vadd.s32 %v746_v46, %v742_v41  ;;  %v701_v16 = vsub.f32 1.0, %v699_v59 }
 0x2c9   : > { %v724_v31 = vadd.s32 %v722_v28, %v716_v19  ;;  %vm725_vm6 = vc.u32 %v723_v24, %v719_v21  ;;  %v751_v32 = vsel %vm750_vm7, 1, %v1827_v26  ;;  %v698_v19 = vsub.f32 1.0, %v686_v63 }
 0x2ca   : > { %v726_v39 = vsel %vm725_vm6, 1, %v1827_v26  ;;  %v753_v55 = vadd.s32 %v751_v32, %v745_v45  ;;  %vm754_vm8 = vc.u32 %v752_v52, %v748_v47  ;;  %v689_v20 = vmul.f32 %v687_v2, %v2118_v27 }
 0x2cb   : > { %v728_v40 = vadd.s32 %v726_v39, %v724_v31  ;;  %v755_v58 = vsel %vm754_vm8, 1, %v1827_v26  ;;  %v692_v21 = vmul.f32 %v686_v63, %v559_v15  ;;  %v695_v23 = vmul.f32 %v693_v13, %v2118_v27 }
 0x2cc   : > { %v757_v62 = vadd.s32 %v755_v58, %v753_v55  ;;  %v703_v4 = vmul.f32 %v701_v16, %v2118_v27  ;;  %v700_v26 = vmul.f32 %v698_v19, %v559_v15  ;;  %vm817_vm5 = vcmask 130048  }
 0x2cd   : > { %v729_v44 = vadd.s32 %v728_v40, %v718_v25  ;;  %v694_v28 = vsub.f32 1.0, %v692_v21 }
 0x2ce   : > { %v758_v12 = vadd.s32 %v757_v62, %v747_v54  ;;  %v702_v37 = vsub.f32 1.0, %v700_v26 }
 0x2cf   : > { %v730_v51 = vadd.s32 %v729_v44, %v720_v38 }
 0x2d0   : > { %v759_v18 = vadd.s32 %v758_v12, %v749_v61  ;;  %v704_v49 = vmul.f32 %v702_v37, %v2122_v29 }
 0x2d1   : > { %v731_v53 = vshrl.u32 %v730_v51, 2 }
 0x2d2   : > { %v760_v22 = vshrl.u32 %v759_v18, 2 }
 0x2d3   : > { %v732_v60 = vmul.u32 6, %v731_v53 }
 0x2d4   : > { %v761_v24 = vmul.u32 6, %v760_v22 }
 0x2d5   : > { %v733_v3 = vsub.s32 %v709_v5, %v732_v60  ;;  %v688_v5 = vsub.f32 1.0, %v559_v15 }
 0x2d6   : > { %v762_v0 = vsub.s32 %v2184_v30, %v761_v24  ;;  %v696_v30 = vmul.f32 %v694_v28, %v2122_v29 }
 0x2d7   : > { %v734_v17 = vsub.s32 0, %v733_v3  ;;  %v690_v35 = vmul.f32 %v688_v5, %v2122_v29 }
 0x2d8   : > { %v763_v38 = vsub.s32 0, %v762_v0 }
 0x2d9   : > { %v735_v33 = vsel %vm707_vm2, %v734_v17, %v733_v3 }
 0x2da   : > { %vm765_vm10 = vcmp.ne.s32.totalorder %v735_v33, 0  ;;  %vm767_vm11 = vcmp.lt.s32.totalorder %v735_v33, 0  ;;  %v771_v1 = vadd.s32 6, %v735_v33  ;;  %v764_v43 = vsel %vm736_vm3, %v763_v38, %v762_v0 }
 0x2db   : > { %vm769_vm13 = vmand %vm767_vm11, %vm765_vm10  ;;  %vm766_vm8 = vcmp.ne.s32.totalorder %v764_v43, 0  ;;  %vm768_vm9 = vcmp.lt.s32.totalorder %v764_v43, 0  ;;  %v772_v48 = vadd.s32 6, %v764_v43 }
 0x2dc   : > { %v773_v25 = vsel %vm769_vm13, %v771_v1, %v735_v33  ;;  %vm770_vm10 = vmand %vm768_vm9, %vm766_vm8 }
 0x2dd   : > { %vm777_vm14 = vcmp.eq.s32.totalorder %v773_v25, 1  ;;  %vm779_vm12 = vcmp.eq.s32.totalorder %v773_v25, 2  ;;  %vm781_vm15 = vcmp.eq.s32.totalorder %v773_v25, 3  ;;  %vm775_vm0 = vcmp.eq.s32.totalorder %v773_v25, 0 }
 0x2de   : > { %vm783_vm1 = vcmp.eq.s32.totalorder %v773_v25, 4  ;;  %vm785_vm2 = vmor %vm779_vm12, %vm781_vm15  ;;  %v797_v31 = vsel %vm781_vm15, %v695_v23, %v689_v20  ;;  %v774_v52 = vsel %vm770_vm10, %v772_v48, %v764_v43 }
 0x2df   : > { %v787_v34 = vsel %vm783_vm1, %v703_v4, %v2118_v27  ;;  %vm795_vm4 = vmor %vm777_vm14, %vm779_vm12  ;;  %vm776_vm3 = vcmp.eq.s32.totalorder %v774_v52, 0  ;;  %vm778_vm11 = vcmp.eq.s32.totalorder %v774_v52, 1  ;;  %vm780_vm13 = vcmp.eq.s32.totalorder %v774_v52, 2 }
 0x2e0   : > { %v789_v36 = vsel %vm785_vm2, %v689_v20, %v787_v34  ;;  %v799_v39 = vsel %vm795_vm4, %v2118_v27, %v797_v31  ;;  %vm805_vm6 = vmor %vm781_vm15, %vm783_vm1  ;;  %vm784_vm15 = vcmp.eq.s32.totalorder %v774_v52, 4 }
 0x2e1   : > { %v791_v40 = vsel %vm777_vm14, %v695_v23, %v789_v36  ;;  %v801_v41 = vsel %vm775_vm0, %v703_v4, %v799_v39  ;;  %vm2220_vm7 = vmor %vm775_vm0, %vm777_vm14  ;;  %v807_v46 = vsel %vm805_vm6, %v2118_v27, %v695_v23  ;;  %vm782_vm14 = vcmp.eq.s32.totalorder %v774_v52, 3 }
 0x2e2   : > { %v793_v42 = vsel %vm775_vm0, %v2118_v27, %v791_v40  ;;  %v820_v44 = vmax.f32 %v801_v41, 0.0  ;;  %v809_v50 = vsel %vm779_vm12, %v703_v4, %v807_v46  ;;  %vm786_vm0 = vmor %vm780_vm13, %vm782_vm14  ;;  %v798_v27 = vsel %vm782_vm14, %v696_v30, %v690_v35 }
 0x2e3   : > { %v813_v47 = vmax.f32 %v793_v42, 0.0  ;;  %v811_v32 = vsel %vm2220_vm7, %v689_v20, %v809_v50  ;;  %v788_v54 = vsel %vm784_vm15, %v704_v49, %v2122_v29  ;;  %vm796_vm12 = vmor %vm778_vm11, %vm780_vm13 }
 0x2e4   : > { %v822_v14 = vmin.f32 %v820_v44, 255.0  ;;  %v827_v53 = vmax.f32 %v811_v32, 0.0  ;;  %v790_v55 = vsel %vm786_vm0, %v690_v35, %v788_v54  ;;  %v800_v56 = vsel %vm796_vm12, %v2122_v29, %v798_v27  ;;  %vm804_vm1 = vmor %vm776_vm3, %vm778_vm11 }
 0x2e5   : > { %v815_v51 = vmin.f32 %v813_v47, 255.0  ;;  %v792_v58 = vsel %vm778_vm11, %v696_v30, %v790_v55  ;;  %v802_v59 = vsel %vm776_vm3, %v704_v49, %v800_v56  ;;  %vm806_vm2 = vmor %vm782_vm14, %vm784_vm15 }
 0x2e6   : > { %1283 = vst.msk [vmem:[%s1957_s28 + $0x10] sm:$0xff] %vm817_vm5, %v822_v14  ;;  %v829_v57 = vmin.f32 %v827_v53, 255.0  ;;  %v794_v60 = vsel %vm776_vm3, %v2122_v29, %v792_v58  ;;  %v821_v61 = vmax.f32 %v802_v59, 0.0  ;;  %v808_v62 = vsel %vm806_vm2, %v2122_v29, %v696_v30 }
 0x2e7   : > { %818 = vst.msk [vmem:[%s1957_s28] sm:$0xff] %vm817_vm5, %v815_v51  ;;  %v814_v63 = vmax.f32 %v794_v60, 0.0  ;;  %v810_v2 = vsel %vm780_vm13, %v704_v49, %v808_v62 }
 0x2e8   : > { %1285 = vst.msk [vmem:[%s1957_s28 + $0x20] sm:$0xff] %vm817_vm5, %v829_v57  ;;  %v823_v3 = vmin.f32 %v821_v61, 255.0  ;;  %v812_v12 = vsel %vm804_vm1, %v690_v35, %v810_v2 }
 0x2e9   : > { %v816_v13 = vmin.f32 %v814_v63, 255.0  ;;  %v828_v15 = vmax.f32 %v812_v12, 0.0 }
 0x2ea   : > { %1284 = vst.msk [vmem:[%s1957_s28 + $0x18] sm:$0xff] %vm817_vm5, %v823_v3 }
 0x2eb   : > { %819 = vst.msk [vmem:[%s1957_s28 + $0x8] sm:$0xff] %vm817_vm5, %v816_v13  ;;  %v830_v16 = vmin.f32 %v828_v15, 255.0 }
 0x2ed   : > { %1286 = vst.msk [vmem:[%s1957_s28 + $0x28] sm:$0xff] %vm817_vm5, %v830_v16 }
 0x2ee PF: > { %p1287_p7 = scmp.ne.s32.totalorder %s1929_s19, 5 }
 0x2f0   : > { %837 = sbr.rel (%p1287_p7) target bundleno = 793 (0x319), region = 64 }
 0x2f5   : > { %v838_v29 = vmul.f32 0.003921569, %v1818_v11  ;;  %v839_v17 = vmul.f32 0.003921569, %v1814_v10  ;;  %v840_v18 = vmul.f32 0.003921569, %v1810_v9  ;;  %v862_v25 = vstv %s1939_s24 }
 0x2f6   : > { %v841_v19 = vmul.f32 0.003921569, %v1806_v8  ;;  %v842_v20 = vmul.f32 0.003921569, %v1802_v7  ;;  %v843_v22 = vmul.f32 0.003921569, %v1798_v6 }
 0x2f7   : > { %v844_v33 = vmax.f32 %v838_v29, 1e-08  ;;  %v845_v21 = vmax.f32 %v839_v17, 1e-08  ;;  %v846_v23 = vmax.f32 %v840_v18, 1e-08 }
 0x2f8   : > { %v847_v1 = vmax.f32 %v841_v19, 1e-08  ;;  %v848_v4 = vmax.f32 %v842_v20, 1e-08  ;;  %v849_v5 = vmax.f32 %v843_v22, 1e-08 }
 0x2f9   : > { %1538 = vlog2.f32 %v844_v33  ;;  %vm899_vm4 = vcmask 130048  }
 0x2fa   : > { %1540 = vlog2.f32 %v845_v21 }
 0x2fb   : > { %1542 = vlog2.f32 %v846_v23 }
 0x2fc   : > { %1544 = vlog2.f32 %v847_v1 }
 0x2fd   : > { %1546 = vlog2.f32 %v848_v4 }
 0x2fe   : > { %1548 = vlog2.f32 %v849_v5 }
 0x2ff   : > { %v1539_v24 = vpop.eup %1538 }
 0x300   : > { %v1541_v26 = vpop.eup %1540  ;;  %v851_v28 = vmul.f32 0.6931472, %v1539_v24 }
 0x301   : > { %v1543_v0 = vpop.eup %1542  ;;  %v853_v31 = vmul.f32 0.6931472, %v1541_v26 }
 0x302   : > { %v1545_v34 = vpop.eup %1544  ;;  %v863_v35 = vmul.f32 %v862_v25, %v851_v28  ;;  %v855_v36 = vmul.f32 0.6931472, %v1543_v0 }
 0x303   : > { %v1547_v37 = vpop.eup %1546  ;;  %v864_v38 = vmul.f32 %v862_v25, %v853_v31  ;;  %v857_v39 = vmul.f32 0.6931472, %v1545_v34 }
 0x304   : > { %v1549_v40 = vpop.eup %1548  ;;  %v869_v30 = vmul.f32 1.442695, %v863_v35  ;;  %v865_v41 = vmul.f32 %v862_v25, %v855_v36  ;;  %v859_v42 = vmul.f32 0.6931472, %v1547_v37 }
 0x305   : > { %v871_v43 = vmul.f32 1.442695, %v864_v38  ;;  %v866_v44 = vmul.f32 %v862_v25, %v857_v39  ;;  %v861_v45 = vmul.f32 0.6931472, %v1549_v40 }
 0x306   : > { %1550 = vpow2.f32 %v869_v30  ;;  %v873_v46 = vmul.f32 1.442695, %v865_v41  ;;  %v867_v47 = vmul.f32 %v862_v25, %v859_v42 }
 0x307   : > { %1552 = vpow2.f32 %v871_v43  ;;  %v875_v48 = vmul.f32 1.442695, %v866_v44  ;;  %v868_v49 = vmul.f32 %v862_v25, %v861_v45 }
 0x308   : > { %1554 = vpow2.f32 %v873_v46  ;;  %v877_v14 = vmul.f32 1.442695, %v867_v47 }
 0x309   : > { %1556 = vpow2.f32 %v875_v48  ;;  %v879_v50 = vmul.f32 1.442695, %v868_v49 }
 0x30a   : > { %1558 = vpow2.f32 %v877_v14 }
 0x30b   : > { %1560 = vpow2.f32 %v879_v50 }
 0x30c   : > { %v1551_v51 = vpop.eup %1550 }
 0x30d   : > { %v1553_v52 = vpop.eup %1552  ;;  %v881_v32 = vmul.f32 255.0, %v1551_v51 }
 0x30e   : > { %v1555_v27 = vpop.eup %1554  ;;  %v882_v53 = vmul.f32 255.0, %v1553_v52 }
 0x30f   : > { %v1557_v54 = vpop.eup %1556  ;;  %v887_v55 = vmax.f32 %v881_v32, 0.0  ;;  %v883_v56 = vmul.f32 255.0, %v1555_v27 }
 0x310   : > { %v1559_v57 = vpop.eup %1558  ;;  %v888_v58 = vmax.f32 %v882_v53, 0.0  ;;  %v884_v59 = vmul.f32 255.0, %v1557_v54 }
 0x311   : > { %v1561_v60 = vpop.eup %1560  ;;  %v893_v61 = vmin.f32 %v887_v55, 255.0  ;;  %v889_v62 = vmax.f32 %v883_v56, 0.0  ;;  %v885_v63 = vmul.f32 255.0, %v1559_v57 }
 0x312   : > { %v894_v2 = vmin.f32 %v888_v58, 255.0  ;;  %v890_v3 = vmax.f32 %v884_v59, 0.0  ;;  %v886_v12 = vmul.f32 255.0, %v1561_v60 }
 0x313   : > { %900 = vst.msk [vmem:[%s1957_s28] sm:$0xff] %vm899_vm4, %v893_v61  ;;  %v895_v13 = vmin.f32 %v889_v62, 255.0  ;;  %v891_v15 = vmax.f32 %v885_v63, 0.0 }
 0x314   : > { %901 = vst.msk [vmem:[%s1957_s28 + $0x8] sm:$0xff] %vm899_vm4, %v894_v2  ;;  %v896_v16 = vmin.f32 %v890_v3, 255.0  ;;  %v892_v29 = vmax.f32 %v886_v12, 0.0 }
 0x315   : > { %902 = vst.msk [vmem:[%s1957_s28 + $0x10] sm:$0xff] %vm899_vm4, %v895_v13  ;;  %v897_v17 = vmin.f32 %v891_v15, 255.0 }
 0x316   : > { %903 = vst.msk [vmem:[%s1957_s28 + $0x18] sm:$0xff] %vm899_vm4, %v896_v16  ;;  %v898_v18 = vmin.f32 %v892_v29, 255.0 }
 0x317   : > { %904 = vst.msk [vmem:[%s1957_s28 + $0x20] sm:$0xff] %vm899_vm4, %v897_v17 }
 0x318   : > { %905 = vst.msk [vmem:[%s1957_s28 + $0x28] sm:$0xff] %vm899_vm4, %v898_v18 }
 0x319 PF: > { %p1288_p8 = scmp.ne.s32.totalorder %s1929_s19, 6 }
 0x31a   : > { %s1828_s12 = smov (!%p1288_p8), 113   ;;  %s1829_s13 = smov (!%p1288_p8), 1  }
 0x31b   : > { %909 = sbr.rel (%p1288_p8) target bundleno = 1005 (0x3ed), region = 68  ;;  %s1830_s18 = smov (!%p1288_p8), 127  }
 0x31c   : > { %s1831_s19 = smov (!%p1288_p8), 15  }
 0x320   : > { %924 = vrot.lane.b32.xlu2 %v1802_v7, %s1828_s12  ;;  %920 = vrot.lane.b32.xlu1 %v1810_v9, %s1828_s12  ;;  %vm952_vm5 = vcmask 7168   ;;  %v1094_v39 = vlaneseq  ;;  %vm1001_vm6 = vcmask 121856   ;;  %vm1026_vm7 = vcmask 1040384  }
 0x321   : > { %916 = vrot.lane.b32.xlu0 %v1818_v11, %s1828_s12  ;;  %vm1048_vm8 = vcmask 1046528   ;;  %v1076_v52 = vmul.f32 4.0, %v1818_v11  ;;  %v1077_v59 = vmul.f32 4.0, %v1814_v10  ;;  %vm1164_vm12 = vcmask 130048  }
 0x322   : > { %v1095_v47 = vshrl.u32 %v1094_v39, 7  ;;  %v2310_v32 = vand.u32 127, %v1094_v39 }
 0x324   : > { %v1096_v60 = vadd.s32 8, %v1095_v47  ;;  %vm1099_vm9 = vcmp.gt.s32.totalorder %v1095_v47, 0  ;;  %vm1105_vm10 = vcmp.gt.s32.totalorder %v2310_v32, 0  ;;  %vm1108_vm3 = vcmp.lt.s32.totalorder %v2310_v32, 15 }
 0x325   : > { %vm1106_vm13 = vmand %vm1099_vm9, %vm1105_vm10 }
 0x326   : > { %vm1102_vm11 = vcmp.lt.s32.totalorder %v1096_v60, 15  ;;  %vm2347_vm15 = vmand %vm1106_vm13, %vm1108_vm3 }
 0x327   : > { %vm1107_vm14 = vmand %vm1102_vm11, %vm1105_vm10 }
 0x328   : > { %926 = vrot.lane.b32.xlu2 %v1798_v6, %s1828_s12  ;;  %922 = vrot.lane.b32.xlu1 %v1806_v8, %s1828_s12  ;;  %vm2355_vm0 = vmand %vm1107_vm14, %vm1108_vm3 }
 0x329   : > { %918 = vrot.lane.b32.xlu0 %v1814_v10, %s1828_s12 }
 0x330   : > { %938 = vrot.lane.b32.xlu2 %v1810_v9, %s1829_s13  ;;  %936 = vrot.lane.b32.xlu1 %v1814_v10, %s1829_s13 }
 0x331   : > { %934 = vrot.lane.b32.xlu0 %v1818_v11, %s1829_s13 }
 0x338   : > { %944 = vrot.lane.b32.xlu2 %v1798_v6, %s1829_s13  ;;  %942 = vrot.lane.b32.xlu1 %v1802_v7, %s1829_s13 }
 0x339   : > { %940 = vrot.lane.b32.xlu0 %v1806_v8, %s1829_s13 }
 0x340   : > { %969 = vrot.lane.b32.xlu2 %v1810_v9, %s1830_s18  ;;  %967 = vrot.lane.b32.xlu1 %v1814_v10, %s1830_s18 }
 0x341   : > { %965 = vrot.lane.b32.xlu0 %v1818_v11, %s1830_s18 }
 0x348   : > { %975 = vrot.lane.b32.xlu2 %v1798_v6, %s1830_s18  ;;  %973 = vrot.lane.b32.xlu1 %v1802_v7, %s1830_s18 }
 0x349   : > { %971 = vrot.lane.b32.xlu0 %v1806_v8, %s1830_s18 }
 0x350   : > { %987 = vrot.lane.b32.xlu2 %v1810_v9, %s1831_s19  ;;  %985 = vrot.lane.b32.xlu1 %v1814_v10, %s1831_s19 }
 0x351   : > { %983 = vrot.lane.b32.xlu0 %v1818_v11, %s1831_s19 }
 0x358   : > { %993 = vrot.lane.b32.xlu2 %v1798_v6, %s1831_s19  ;;  %991 = vrot.lane.b32.xlu1 %v1802_v7, %s1831_s19 }
 0x359   : > { %989 = vrot.lane.b32.xlu0 %v1806_v8, %s1831_s19 }
 0x37a   : > { %v925_v19 = vpop.permute.xlu2 %924 }
 0x382   : > { %v927_v20 = vpop.permute.xlu2 %926 }
 0x38a   : > { %v939_v33 = vpop.permute.xlu2 %938 }
 0x392   : > { %v921_v21 = vpop.permute.xlu1 %920  ;;  %v945_v1 = vpop.permute.xlu2 %944 }
 0x393   : > { %v917_v22 = vpop.permute.xlu0 %916  ;;  %v958_v38 = vsel %vm952_vm5, %v927_v20, %v945_v1  ;;  %v955_v40 = vsel %vm952_vm5, %v921_v21, %v939_v33  ;;  %v1080_v21 = vmul.f32 4.0, %v1802_v7 }
 0x394   : > { %v964_v42 = vadd.f32 %v1798_v6, %v958_v38  ;;  %v961_v43 = vadd.f32 %v1810_v9, %v955_v40 }
 0x39a   : > { %v923_v23 = vpop.permute.xlu1 %922  ;;  %v970_v25 = vpop.permute.xlu2 %969 }
 0x39b   : > { %v919_v4 = vpop.permute.xlu0 %918 }
 0x3a2   : > { %v937_v5 = vpop.permute.xlu1 %936  ;;  %v976_v0 = vpop.permute.xlu2 %975 }
 0x3a3   : > { %v935_v24 = vpop.permute.xlu0 %934  ;;  %v954_v30 = vsel %vm952_vm5, %v919_v4, %v937_v5 }
 0x3a4   : > { %v953_v41 = vsel %vm952_vm5, %v917_v22, %v935_v24  ;;  %v960_v44 = vadd.f32 %v1814_v10, %v954_v30 }
 0x3a5   : > { %v959_v48 = vadd.f32 %v1818_v11, %v953_v41 }
 0x3aa   : > { %v943_v26 = vpop.permute.xlu1 %942  ;;  %v988_v35 = vpop.permute.xlu2 %987 }
 0x3ab   : > { %v941_v28 = vpop.permute.xlu0 %940  ;;  %v1004_v45 = vsel %vm1001_vm6, %v970_v25, %v988_v35  ;;  %v957_v54 = vsel %vm952_vm5, %v925_v19, %v943_v26  ;;  %v1081_v26 = vmul.f32 4.0, %v1798_v6 }
 0x3ac   : > { %v2313_v53 = vadd.f32 %v1004_v45, %v961_v43  ;;  %v956_v55 = vsel %vm952_vm5, %v923_v23, %v941_v28  ;;  %v963_v2 = vadd.f32 %v1802_v7, %v957_v54  ;;  %v1078_v28 = vmul.f32 4.0, %v1810_v9 }
 0x3ad   : > { %v962_v3 = vadd.f32 %v1806_v8, %v956_v55 }
 0x3ae   : > { %v1029_v12 = vrot.slane %v2313_v53, 7  ;;  %v1052_v29 = vrot.slane %v2313_v53, 1 }
 0x3b2   : > { %v968_v31 = vpop.permute.xlu1 %967  ;;  %v994_v49 = vpop.permute.xlu2 %993 }
 0x3b3   : > { %v966_v34 = vpop.permute.xlu0 %965  ;;  %v1007_v57 = vsel %vm1001_vm6, %v976_v0, %v994_v49 }
 0x3b4   : > { %v1013_v13 = vadd.f32 %v1007_v57, %v964_v42 }
 0x3b6   : > { %v1019_v25 = vrot.slane %v1013_v13, 7  ;;  %v1056_v39 = vrot.slane %v1013_v13, 1 }
 0x3ba   : > { %v974_v36 = vpop.permute.xlu1 %973 }
 0x3bb   : > { %v972_v37 = vpop.permute.xlu0 %971 }
 0x3c2   : > { %v986_v46 = vpop.permute.xlu1 %985 }
 0x3c3   : > { %v1003_v14 = vsel %vm1001_vm6, %v968_v31, %v986_v46  ;;  %v984_v50 = vpop.permute.xlu0 %983 }
 0x3c4   : > { %v1009_v51 = vadd.f32 %v1003_v14, %v960_v44  ;;  %v1002_v27 = vsel %vm1001_vm6, %v966_v34, %v984_v50 }
 0x3c5   : > { %v1008_v56 = vadd.f32 %v1002_v27, %v959_v48 }
 0x3c6   : > { %v1017_v58 = vrot.slane %v1009_v51, 7  ;;  %v1050_v61 = vrot.slane %v1009_v51, 1 }
 0x3c7   : > { %v1027_v62 = vrot.slane %v1008_v56, 7  ;;  %v1049_v63 = vrot.slane %v1008_v56, 1 }
 0x3c9   : > { %v1028_v15 = vsel %vm1026_vm7, %v1027_v62, %v1017_v58  ;;  %v1039_v16 = vsel %vm1026_vm7, %v1017_v58, %v1027_v62  ;;  %v1051_v20 = vsel %vm1048_vm8, %v1049_v63, %v1050_v61  ;;  %v1067_v33 = vsel %vm1048_vm8, %v1050_v61, %v1049_v63 }
 0x3ca   : > { %v1042_v17 = vadd.f32 %v1039_v16, %v1008_v56  ;;  %v1043_v18 = vadd.f32 %v1028_v15, %v1009_v51  ;;  %v992_v19 = vpop.permute.xlu1 %991 }
 0x3cb   : > { %v1006_v22 = vsel %vm1001_vm6, %v974_v36, %v992_v19  ;;  %v990_v23 = vpop.permute.xlu0 %989  ;;  %v1079_v36 = vmul.f32 4.0, %v1806_v8 }
 0x3cc   : > { %v1070_v1 = vadd.f32 %v1051_v20, %v1042_v17  ;;  %v1071_v4 = vadd.f32 %v1067_v33, %v1043_v18  ;;  %v1012_v5 = vadd.f32 %v1006_v22, %v963_v2  ;;  %v1005_v24 = vsel %vm1001_vm6, %v972_v37, %v990_v23 }
 0x3cd   : > { %v1011_v0 = vadd.f32 %v1005_v24, %v962_v3  ;;  %v1139_v3 = vstv %s1939_s24 }
 0x3ce   : > { %v1082_v31 = vadd.f32 %v1076_v52, %v1070_v1  ;;  %v1083_v34 = vadd.f32 %v1077_v59, %v1071_v4  ;;  %v1031_v35 = vrot.slane %v1012_v5, 7  ;;  %v1055_v38 = vrot.slane %v1012_v5, 1 }
 0x3cf   : > { %v1018_v40 = vrot.slane %v1011_v0, 7  ;;  %v1053_v30 = vrot.slane %v1011_v0, 1 }
 0x3d0   : > { %v1088_v37 = vmul.f32 0.07692308, %v1082_v31  ;;  %v1089_v41 = vmul.f32 0.07692308, %v1083_v34  ;;  %v1032_v42 = vsel %vm1026_vm7, %v1031_v35, %v1019_v25  ;;  %v1041_v43 = vsel %vm1026_vm7, %v1019_v25, %v1031_v35 }
 0x3d1   : > { %v1046_v44 = vadd.f32 %v1041_v43, %v1012_v5  ;;  %v1047_v45 = vadd.f32 %v1032_v42, %v1013_v13  ;;  %v1057_v46 = vsel %vm1048_vm8, %v1055_v38, %v1056_v39  ;;  %v1069_v47 = vsel %vm1048_vm8, %v1056_v39, %v1055_v38 }
 0x3d2   : > { %v1111_v49 = vmax.f32 %v1088_v37, 0.0  ;;  %v1112_v14 = vmax.f32 %v1089_v41, 0.0  ;;  %v1030_v50 = vsel %vm1026_vm7, %v1029_v12, %v1018_v40  ;;  %v1040_v51 = vsel %vm1026_vm7, %v1018_v40, %v1029_v12 }
 0x3d3   : > { %v1074_v52 = vadd.f32 %v1057_v46, %v1046_v44  ;;  %v1075_v27 = vadd.f32 %v1069_v47, %v1047_v45  ;;  %v1044_v55 = vadd.f32 %v1040_v51, %v2313_v53  ;;  %v1045_v56 = vadd.f32 %v1030_v50, %v1011_v0 }
 0x3d4   : > { %v1117_v57 = vmin.f32 %v1111_v49, 255.0  ;;  %v1118_v58 = vmin.f32 %v1112_v14, 255.0  ;;  %v1054_v59 = vsel %vm1048_vm8, %v1052_v29, %v1053_v30  ;;  %v1068_v60 = vsel %vm1048_vm8, %v1053_v30, %v1052_v29 }
 0x3d5   : > { %v1086_v61 = vadd.f32 %v1080_v21, %v1074_v52  ;;  %v1087_v62 = vadd.f32 %v1081_v26, %v1075_v27  ;;  %v1072_v63 = vadd.f32 %v1054_v59, %v1044_v55  ;;  %v1073_v2 = vadd.f32 %v1068_v60, %v1045_v56 }
 0x3d6   : > { %v1127_v32 = vsel %vm2347_vm15, %v1117_v57, %v1818_v11  ;;  %v1128_v53 = vsel %vm2355_vm0, %v1118_v58, %v1814_v10 }
 0x3d7   : > { %v1133_v12 = vsub.f32 %v1818_v11, %v1127_v32  ;;  %v1092_v13 = vmul.f32 0.07692308, %v1086_v61  ;;  %v1093_v15 = vmul.f32 0.07692308, %v1087_v62  ;;  %v1134_v16 = vsub.f32 %v1814_v10, %v1128_v53 }
 0x3d8   : > { %v1084_v29 = vadd.f32 %v1078_v28, %v1072_v63  ;;  %v1085_v17 = vadd.f32 %v1079_v36, %v1073_v2 }
 0x3d9   : > { %v1140_v18 = vmul.f32 %v1139_v3, %v1133_v12  ;;  %v1115_v19 = vmax.f32 %v1092_v13, 0.0  ;;  %v1116_v20 = vmax.f32 %v1093_v15, 0.0  ;;  %v1141_v33 = vmul.f32 %v1139_v3, %v1134_v16 }
 0x3da   : > { %v1090_v21 = vmul.f32 0.07692308, %v1084_v29  ;;  %v1091_v22 = vmul.f32 0.07692308, %v1085_v17 }
 0x3db   : > { %v1146_v23 = vadd.f32 %v1140_v18, %v1127_v32  ;;  %v1121_v1 = vmin.f32 %v1115_v19, 255.0  ;;  %v1122_v4 = vmin.f32 %v1116_v20, 255.0  ;;  %v1147_v5 = vadd.f32 %v1141_v33, %v1128_v53 }
 0x3dc   : > { %v1113_v24 = vmax.f32 %v1090_v21, 0.0  ;;  %v1114_v11 = vmax.f32 %v1091_v22, 0.0 }
 0x3dd   : > { %v1152_v25 = vmax.f32 %v1146_v23, 0.0  ;;  %v1131_v10 = vsel %vm2347_vm15, %v1121_v1, %v1802_v7  ;;  %v1132_v26 = vsel %vm2355_vm0, %v1122_v4, %v1798_v6  ;;  %v1153_v28 = vmax.f32 %v1147_v5, 0.0 }
 0x3de   : > { %v1137_v0 = vsub.f32 %v1802_v7, %v1131_v10  ;;  %v1138_v31 = vsub.f32 %v1798_v6, %v1132_v26  ;;  %v1119_v34 = vmin.f32 %v1113_v24, 255.0  ;;  %v1120_v35 = vmin.f32 %v1114_v11, 255.0 }
 0x3df   : > { %v1158_v38 = vmin.f32 %v1152_v25, 255.0  ;;  %v1159_v39 = vmin.f32 %v1153_v28, 255.0 }
 0x3e0   : > { %v1144_v36 = vmul.f32 %v1139_v3, %v1137_v0  ;;  %v1145_v40 = vmul.f32 %v1139_v3, %v1138_v31  ;;  %v1129_v30 = vsel %vm2347_vm15, %v1119_v34, %v1810_v9  ;;  %v1130_v37 = vsel %vm2355_vm0, %v1120_v35, %v1806_v8 }
 0x3e1   : > { %1165 = vst.msk [vmem:[%s1957_s28] sm:$0xff] %vm1164_vm12, %v1158_v38  ;;  %v1135_v7 = vsub.f32 %v1810_v9, %v1129_v30  ;;  %v1136_v6 = vsub.f32 %v1806_v8, %v1130_v37 }
 0x3e2   : > { %v1150_v41 = vadd.f32 %v1144_v36, %v1131_v10  ;;  %v1151_v42 = vadd.f32 %v1145_v40, %v1132_v26  ;;  %1166 = vst.msk [vmem:[%s1957_s28 + $0x8] sm:$0xff] %vm1164_vm12, %v1159_v39 }
 0x3e3   : > { %v1142_v43 = vmul.f32 %v1139_v3, %v1135_v7  ;;  %v1143_v44 = vmul.f32 %v1139_v3, %v1136_v6 }
 0x3e4   : > { %v1156_v45 = vmax.f32 %v1150_v41, 0.0  ;;  %v1157_v46 = vmax.f32 %v1151_v42, 0.0 }
 0x3e5   : > { %v1148_v47 = vadd.f32 %v1142_v43, %v1129_v30  ;;  %v1149_v48 = vadd.f32 %v1143_v44, %v1130_v37 }
 0x3e6   : > { %v1162_v49 = vmin.f32 %v1156_v45, 255.0  ;;  %v1163_v14 = vmin.f32 %v1157_v46, 255.0 }
 0x3e7   : > { %v1154_v50 = vmax.f32 %v1148_v47, 0.0  ;;  %v1155_v51 = vmax.f32 %v1149_v48, 0.0 }
 0x3e8   : > { %1169 = vst.msk [vmem:[%s1957_s28 + $0x20] sm:$0xff] %vm1164_vm12, %v1162_v49 }
 0x3e9   : > { %1170 = vst.msk [vmem:[%s1957_s28 + $0x28] sm:$0xff] %vm1164_vm12, %v1163_v14  ;;  %v1160_v8 = vmin.f32 %v1154_v50, 255.0  ;;  %v1161_v9 = vmin.f32 %v1155_v51, 255.0 }
 0x3eb   : > { %1167 = vst.msk [vmem:[%s1957_s28 + $0x10] sm:$0xff] %vm1164_vm12, %v1160_v8 }
 0x3ec   : > { %1168 = vst.msk [vmem:[%s1957_s28 + $0x18] sm:$0xff] %vm1164_vm12, %v1161_v9 }
 0x3ed PF: > { %s1304_s20 = smul.u32 48, %s1897_s3  ;;  %s1184_s21 = sshll.u32 %s1957_s28, 4  ;;  %s1185_s21 = int_to_ptr.vmem [resolvable:$true] %s1184_s21 }
 0x3ee   : > { %s1172_s26 = scalar_lea.sflag [#allocation8], %s134_s17  ;;  %s1630_s3 = scalar_lea.hbm %s2435_s5, 96 }
 0x3ef   : > { %s1183_s24 = scalar_lea.hbm %s2435_s5, %s1304_s20 }
 0x3f0   : > { %s1186_s25 = sshll.u32 %s1183_s24, 4  ;;  %s1187_s25 = int_to_ptr.hbm [resolvable:$true] %s1186_s25 }
 0x3f1   : > { %s1624_s27 = sshra.s32 %s1187_s25, 4  ;;  %s1625_s27 = int_to_ptr.hbm [resolvable:$true] %s1624_s27 }
 0x3f2   : > { %s1626_s29 = scalar_lea.hbm %s1625_s27, 48  ;;  %p1631_p12 = scmp.lt.s32.totalorder %s1625_s27, %s2435_s5 }
 0x3f3   : > { %p1627_p9 = scmp.ne.s32.totalorder %s1625_s27, %s1626_s29  ;;  %p1632_p13 = scmp.lt.s32.totalorder %s1630_s3, %s1626_s29 }
 0x3f5   : > { %p1628_p10 = pnand %p1627_p9, %p1914_p5  ;;  %p1633_p0 = por %p1632_p13, %p1631_p12 }
 0x3f7   : > { %p1629_p11 = pneg %p1628_p10 }
 0x3f9   : > { %p1634_p1 = pnand %p1633_p0, %p1629_p11 }
 0x3fb   : > { %1637 = shalt.err (!%p1634_p1)
}
 0x3fc   : > { %s1832_s17 = smov 128   ;;  %s1833_s7 = smov 8  }
 0x3fd   : > { %1330 = dma.vmem_to_hbm [thread:$0]  (%p1914_p5), %s1185_s21, 768, %s1187_s25, %s1172_s26, %s1832_s17, %s1832_s17, %s1833_s7  }
 0x3fe PF: > { %p1337_p2 = scmp.ge.s32.totalorder %s1746_s9, 2  ;;  %s1201_s10 = sand.u32 1, %s1734_s1  }
 0x3ff   : > { %s1202_s12 = scalar_lea.sflag [#allocation8], %s1201_s10 }
 0x400   : > { %p1333_p3 = pnand %p1337_p2, %p1918_p6 }
 0x402   : > { %p1334_p4 = pneg %p1333_p3 }
 0x404   : > { %1729 = dma.done.wait (%p1334_p4), %s1202_s12, 768  }
 0x405   : > { %1731 = vsyncadd (%p1334_p4), %s1202_s12, 4294966528  ;;  %p38_p7 = scmp.ge.s32.totalorder %s1901_s11, 4   ;;  %s2447_s1 = smov %s1738_s8 }
 0x406   : > { %s2448_s8 = smov %s1742_s2  ;;  %s2449_s2 = smov %s1912_s14 }
 0x407   : > { %s2450_s9 = smov %s1901_s11  ;;  %40 = sbr.rel (!%p38_p7) target bundleno = 14 (0xe), region = 105 }
 0x40c   :  { %1208 = vsyncpa [#allocation8], 1 }
 0x40d   :  { %1210 = vsyncpa [#allocation8 + $0x1], 1 }

</bundles_post_ra>
